<compile_context>
chip_gen: v7x
topology: tpu7x:2x2x1
jax: 0.10.0
libtpu: 0.0.40
codegen_flags: <defaults>
</compile_context>

<pallas_src>
import functools
import math

import jax
import jax.numpy as jnp
from jax import lax
from jax.experimental import pallas as pl
from jax.experimental.pallas import tpu as pltpu


def _mhsa_kernel(xq_ref, xkv_ref, wq_ref, bq_ref, wkv_ref, bkv_ref,
                 wo_ref, bo_ref, o_ref,
                 q_s, m_s, l_s, acc_s,
                 *, num_heads, head_dim, embed_dim):
    kv = pl.program_id(2)
    n_kv = pl.num_programs(2)

    # --- init per (batch, q-tile): project Q once, reset online-softmax state.
    @pl.when(kv == 0)
    def _init():
        xq = xq_ref[0].astype(jnp.bfloat16)                       # (TQ, E)
        # Wq already (in, out) and pre-scaled by 1/sqrt(D); bias pre-scaled too.
        q = jnp.dot(xq, wq_ref[...],
                    preferred_element_type=jnp.float32) + bq_ref[...]
        q_s[...] = q.astype(jnp.bfloat16)
        m_s[...] = jnp.full(m_s.shape, -jnp.inf, dtype=m_s.dtype)
        l_s[...] = jnp.zeros(l_s.shape, dtype=l_s.dtype)
        acc_s[...] = jnp.zeros(acc_s.shape, dtype=acc_s.dtype)

    # --- project K and V for this kv tile with a single fused matmul.
    xkv = xkv_ref[0].astype(jnp.bfloat16)                          # (TKV, E)
    kvp = (jnp.dot(xkv, wkv_ref[...],
                   preferred_element_type=jnp.float32) + bkv_ref[...])
    kvp = kvp.astype(jnp.bfloat16)                                 # (TKV, 2E)
    k = kvp[:, :embed_dim]
    v = kvp[:, embed_dim:]

    q_all = q_s[...]                                               # (TQ, E) bf16

    # --- online softmax per head; head output accumulated in-place at lane
    #     offset h*D of the (TQ, E) scratch (no concatenate, no .T anywhere).
    for h in range(num_heads):
        lo = h * head_dim
        hi = lo + head_dim
        qh = q_all[:, lo:hi]                                       # (TQ, D)
        kh = k[:, lo:hi]                                           # (TKV, D)
        vh = v[:, lo:hi]                                           # (TKV, D)

        # q . k^T without materializing a transpose (contract last dims).
        s = lax.dot_general(qh, kh, (((1,), (1,)), ((), ())),
                            preferred_element_type=jnp.float32)    # (TQ, TKV)

        m_prev = m_s[h]                                            # (TQ, 1)
        m_new = jnp.maximum(m_prev, jnp.max(s, axis=-1, keepdims=True))
        alpha = jnp.exp(m_prev - m_new)
        p = jnp.exp(s - m_new)
        l_s[h] = alpha * l_s[h] + jnp.sum(p, axis=-1, keepdims=True)
        m_s[h] = m_new
        acc_s[:, lo:hi] = alpha * acc_s[:, lo:hi] + jnp.dot(
            p.astype(jnp.bfloat16), vh, preferred_element_type=jnp.float32)

    # --- finalize: normalize, combine heads with the output projection.
    @pl.when(kv == n_kv - 1)
    def _finalize():
        for h in range(num_heads):
            lo = h * head_dim
            hi = lo + head_dim
            acc_s[:, lo:hi] = acc_s[:, lo:hi] * pl.reciprocal(l_s[h], approx=True)
        concat = acc_s[...].astype(jnp.bfloat16)                   # (TQ, E)
        out = jnp.dot(concat, wo_ref[...],
                      preferred_element_type=jnp.float32) + bo_ref[...]
        o_ref[0] = out.astype(o_ref.dtype)


def _pick_tile(seq_len, target):
    """Largest tile <= target that divides seq_len (whole sequence if tiny)."""
    if seq_len <= target:
        return seq_len
    t = target
    while t >= 8:
        if seq_len % t == 0:
            return t
        t //= 2
    return seq_len


def multi_head_self_attention(x, params, *, num_heads):
    """x: (B, S, E) float32; params hold torch-layout (out,in) weights."""
    B, S, E = x.shape
    assert E % num_heads == 0
    head_dim = E // num_heads
    scale = 1.0 / math.sqrt(float(head_dim))

    # Wrapper-side weight prep: (in,out) layout, scale folded into Q, K/V fused,
    # bf16 MXU operands, f32 biases.
    wq_t = (params["wq"].T * scale).astype(jnp.bfloat16)                 # (E, E)
    bq = (params["bq"].reshape(1, E) * scale).astype(jnp.float32)        # (1, E)
    w_kv = jnp.concatenate([params["wk"].T, params["wv"].T],
                           axis=1).astype(jnp.bfloat16)                  # (E, 2E)
    b_kv = jnp.concatenate([params["bk"].reshape(1, E),
                            params["bv"].reshape(1, E)],
                           axis=1).astype(jnp.float32)                   # (1, 2E)
    wo_t = params["wo"].T.astype(jnp.bfloat16)                           # (E, E)
    bo = params["bo"].reshape(1, E).astype(jnp.float32)                  # (1, E)

    TQ = _pick_tile(S, 256)
    TKV = _pick_tile(S, 512)
    n_q = S // TQ
    n_kv = S // TKV

    kernel = functools.partial(_mhsa_kernel, num_heads=num_heads,
                               head_dim=head_dim, embed_dim=E)

    const = lambda b, qi, ki: (0, 0)   # weights stay VMEM-resident across kv axis

    return pl.pallas_call(
        kernel,
        out_shape=jax.ShapeDtypeStruct((B, S, E), x.dtype),
        grid_spec=pltpu.PrefetchScalarGridSpec(
            num_scalar_prefetch=0,
            grid=(B, n_q, n_kv),
            in_specs=[
                pl.BlockSpec((1, TQ, E), lambda b, qi, ki: (b, qi, 0)),   # x (Q rows)
                pl.BlockSpec((1, TKV, E), lambda b, qi, ki: (b, ki, 0)),  # x (KV rows)
                pl.BlockSpec((E, E), const), pl.BlockSpec((1, E), const),          # Wq, bq
                pl.BlockSpec((E, 2 * E), const), pl.BlockSpec((1, 2 * E), const),  # Wkv, bkv
                pl.BlockSpec((E, E), const), pl.BlockSpec((1, E), const),          # Wo, bo
            ],
            out_specs=pl.BlockSpec((1, TQ, E), lambda b, qi, ki: (b, qi, 0)),
            scratch_shapes=[
                pltpu.VMEM((TQ, E), jnp.bfloat16),               # scaled Q (per q-tile)
                pltpu.VMEM((num_heads, TQ, 1), jnp.float32),     # running max
                pltpu.VMEM((num_heads, TQ, 1), jnp.float32),     # running sum
                pltpu.VMEM((TQ, E), jnp.float32),                # head outputs at lane offsets
            ],
        ),
        compiler_params=pltpu.CompilerParams(
            dimension_semantics=("parallel", "parallel", "arbitrary"),
            vmem_limit_bytes=64 * 1024 * 1024,
        ),
    )(x, x, wq_t, bq, w_kv, b_kv, wo_t, bo)


def init_params(key, embed_dim):
    """Deterministic init mimicking nn.Linear default uniform(-1/sqrt(in), 1/sqrt(in))."""
    bound = 1.0 / math.sqrt(embed_dim)
    keys = jax.random.split(key, 8)

    def w(k):  # (out, in) like torch
        return jax.random.uniform(k, (embed_dim, embed_dim), jnp.float32, -bound, bound)

    def b(k):
        return jax.random.uniform(k, (embed_dim,), jnp.float32, -bound, bound)

    return {
        "wq": w(keys[0]), "bq": b(keys[1]),
        "wk": w(keys[2]), "bk": b(keys[3]),
        "wv": w(keys[4]), "bv": b(keys[5]),
        "wo": w(keys[6]), "bo": b(keys[7]),
    }


def reference_mhsa(x, params, *, num_heads):
    """Pure-JAX f32 reference replicating the PyTorch module's forward."""
    B, S, E = x.shape
    D = E // num_heads

    def linear(a, w, b):
        return a @ w.T + b

    q = linear(x, params["wq"], params["bq"])
    k = linear(x, params["wk"], params["bk"])
    v = linear(x, params["wv"], params["bv"])

    def sep(t):
        return t.reshape(B, S, num_heads, D).transpose(0, 2, 1, 3)   # (B, H, S, D)

    q, k, v = sep(q), sep(k), sep(v)
    scores = jnp.einsum("bhqd,bhkd->bhqk", q, k) / jnp.sqrt(jnp.float32(D))
    weights = jax.nn.softmax(scores, axis=-1)
    attn = jnp.einsum("bhqk,bhkd->bhqd", weights, v)
    concat = attn.transpose(0, 2, 1, 3).reshape(B, S, E)
    return linear(concat, params["wo"], params["bo"])


if __name__ == "__main__":
    B, S, E, H = 2, 8, 32, 8

    key = jax.random.PRNGKey(0)
    k_x, k_p = jax.random.split(key)
    x = jax.random.normal(k_x, (B, S, E), jnp.float32)
    params = init_params(k_p, E)

    out = multi_head_self_attention(x, params, num_heads=H)
    out = jax.block_until_ready(out)

    ref = reference_mhsa(x, params, num_heads=H)
    assert out.shape == (B, S, E)
    # bf16 MXU operands + approx reciprocal vs f32 reference -> loose tolerance.
    max_err = jnp.max(jnp.abs(out - ref))
    assert max_err < 5e-2, f"mismatch vs JAX reference (max abs err {max_err})"

    print("KERNEL_OK")
</pallas_src>

<mosaic_0001>
module attributes {stable_mosaic.version = 11 : i64} {
  func.func @_mhsa_kernel(%arg0: i32, %arg1: i32, %arg2: i32, %arg3: memref<1x8x32xf32, #tpu.memory_space<vmem>>, %arg4: memref<1x8x32xf32, #tpu.memory_space<vmem>>, %arg5: memref<32x32xbf16, #tpu.memory_space<vmem>>, %arg6: memref<1x32xf32, #tpu.memory_space<vmem>>, %arg7: memref<32x64xbf16, #tpu.memory_space<vmem>>, %arg8: memref<1x64xf32, #tpu.memory_space<vmem>>, %arg9: memref<32x32xbf16, #tpu.memory_space<vmem>>, %arg10: memref<1x32xf32, #tpu.memory_space<vmem>>, %arg11: memref<1x8x32xf32, #tpu.memory_space<vmem>>, %arg12: memref<8x32xbf16, #tpu.memory_space<vmem>>, %arg13: memref<8x8x1xf32, #tpu.memory_space<vmem>>, %arg14: memref<8x8x1xf32, #tpu.memory_space<vmem>>, %arg15: memref<8x32xf32, #tpu.memory_space<vmem>>) attributes {dimension_semantics = [#tpu.dimension_semantics<parallel>, #tpu.dimension_semantics<parallel>, #tpu.dimension_semantics<arbitrary>], iteration_bounds = array<i64: 2, 1, 1>, scalar_prefetch = 0 : i64, scratch_operands = 4 : i64, tpu.core_type = #tpu.core_type<tc>, window_params = [{transform_indices = @transform_0, window_bounds = array<i64: 1, 8, 32>}, {transform_indices = @transform_1, window_bounds = array<i64: 1, 8, 32>}, {pipeline_mode = #tpu.pipeline_mode<synchronous>, transform_indices = @transform_2, window_bounds = array<i64: 32, 32>}, {pipeline_mode = #tpu.pipeline_mode<synchronous>, transform_indices = @transform_3, window_bounds = array<i64: 1, 32>}, {pipeline_mode = #tpu.pipeline_mode<synchronous>, transform_indices = @transform_4, window_bounds = array<i64: 32, 64>}, {pipeline_mode = #tpu.pipeline_mode<synchronous>, transform_indices = @transform_5, window_bounds = array<i64: 1, 64>}, {pipeline_mode = #tpu.pipeline_mode<synchronous>, transform_indices = @transform_6, window_bounds = array<i64: 32, 32>}, {pipeline_mode = #tpu.pipeline_mode<synchronous>, transform_indices = @transform_7, window_bounds = array<i64: 1, 32>}, {transform_indices = @transform_8, window_bounds = array<i64: 1, 8, 32>}]} {
    %c0_i32 = arith.constant 0 : i32
    %0 = arith.cmpi eq, %arg2, %c0_i32 : i32
    %1 = arith.extui %0 : i1 to i32
    %c0_i32_0 = arith.constant 0 : i32
    %2 = arith.cmpi ne, %1, %c0_i32_0 : i32
    scf.if %2 {
      %c0_158 = arith.constant 0 : index
      %c0_159 = arith.constant 0 : index
      %c0_160 = arith.constant 0 : index
      %282 = vector.load %arg3[%c0_158, %c0_159, %c0_160] : memref<1x8x32xf32, #tpu.memory_space<vmem>>, vector<1x8x32xf32>
      %283 = vector.shape_cast %282 : vector<1x8x32xf32> to vector<8x32xf32>
      %284 = arith.truncf %283 : vector<8x32xf32> to vector<8x32xbf16>
      %c0_161 = arith.constant 0 : index
      %c0_162 = arith.constant 0 : index
      %285 = vector.load %arg5[%c0_161, %c0_162] : memref<32x32xbf16, #tpu.memory_space<vmem>>, vector<32x32xbf16>
      %cst_163 = arith.constant dense<0.000000e+00> : vector<8x32xf32>
      %286 = tpu.matmul %284, %285, %cst_163 {dimension_numbers = #tpu.dot_dimension_numbers<[1], [0], [0], [1], [0, 0, 1, 1], [], []>} : vector<8x32xbf16>, vector<32x32xbf16>, vector<8x32xf32> -> vector<8x32xf32>
      %c0_164 = arith.constant 0 : index
      %c0_165 = arith.constant 0 : index
      %287 = vector.load %arg6[%c0_164, %c0_165] : memref<1x32xf32, #tpu.memory_space<vmem>>, vector<1x32xf32>
      %288 = vector.broadcast %287 : vector<1x32xf32> to vector<8x32xf32>
      %289 = arith.addf %286, %288 : vector<8x32xf32>
      %290 = arith.truncf %289 : vector<8x32xf32> to vector<8x32xbf16>
      %c0_166 = arith.constant 0 : index
      %c0_167 = arith.constant 0 : index
      %291 = vector.load %arg12[%c0_166, %c0_167] : memref<8x32xbf16, #tpu.memory_space<vmem>>, vector<8x32xbf16>
      tpu.vector_store %arg12[%c0_166, %c0_167], %290 {strides = array<i32>} : memref<8x32xbf16, #tpu.memory_space<vmem>>, vector<8x32xbf16>,
      %cst_168 = arith.constant 0xFF800000 : f32
      %292 = vector.broadcast %cst_168 : f32 to vector<8x8x1xf32>
      %c0_169 = arith.constant 0 : index
      %c0_170 = arith.constant 0 : index
      %c0_171 = arith.constant 0 : index
      %293 = vector.load %arg13[%c0_169, %c0_170, %c0_171] : memref<8x8x1xf32, #tpu.memory_space<vmem>>, vector<8x8x1xf32>
      tpu.vector_store %arg13[%c0_169, %c0_170, %c0_171], %292 {strides = array<i32>} : memref<8x8x1xf32, #tpu.memory_space<vmem>>, vector<8x8x1xf32>,
      %cst_172 = arith.constant 0.000000e+00 : f32
      %294 = vector.broadcast %cst_172 : f32 to vector<8x8x1xf32>
      %c0_173 = arith.constant 0 : index
      %c0_174 = arith.constant 0 : index
      %c0_175 = arith.constant 0 : index
      %295 = vector.load %arg14[%c0_173, %c0_174, %c0_175] : memref<8x8x1xf32, #tpu.memory_space<vmem>>, vector<8x8x1xf32>
      tpu.vector_store %arg14[%c0_173, %c0_174, %c0_175], %294 {strides = array<i32>} : memref<8x8x1xf32, #tpu.memory_space<vmem>>, vector<8x8x1xf32>,
      %cst_176 = arith.constant 0.000000e+00 : f32
      %296 = vector.broadcast %cst_176 : f32 to vector<8x32xf32>
      %c0_177 = arith.constant 0 : index
      %c0_178 = arith.constant 0 : index
      %297 = vector.load %arg15[%c0_177, %c0_178] : memref<8x32xf32, #tpu.memory_space<vmem>>, vector<8x32xf32>
      tpu.vector_store %arg15[%c0_177, %c0_178], %296 {strides = array<i32>} : memref<8x32xf32, #tpu.memory_space<vmem>>, vector<8x32xf32>,
    } else {
    }
    %c0 = arith.constant 0 : index
    %c0_1 = arith.constant 0 : index
    %c0_2 = arith.constant 0 : index
    %3 = vector.load %arg4[%c0, %c0_1, %c0_2] : memref<1x8x32xf32, #tpu.memory_space<vmem>>, vector<1x8x32xf32>
    %4 = vector.shape_cast %3 : vector<1x8x32xf32> to vector<8x32xf32>
    %5 = arith.truncf %4 : vector<8x32xf32> to vector<8x32xbf16>
    %c0_3 = arith.constant 0 : index
    %c0_4 = arith.constant 0 : index
    %6 = vector.load %arg7[%c0_3, %c0_4] : memref<32x64xbf16, #tpu.memory_space<vmem>>, vector<32x64xbf16>
    %cst = arith.constant dense<0.000000e+00> : vector<8x64xf32>
    %7 = tpu.matmul %5, %6, %cst {dimension_numbers = #tpu.dot_dimension_numbers<[1], [0], [0], [1], [0, 0, 1, 1], [], []>} : vector<8x32xbf16>, vector<32x64xbf16>, vector<8x64xf32> -> vector<8x64xf32>
    %c0_5 = arith.constant 0 : index
    %c0_6 = arith.constant 0 : index
    %8 = vector.load %arg8[%c0_5, %c0_6] : memref<1x64xf32, #tpu.memory_space<vmem>>, vector<1x64xf32>
    %9 = vector.broadcast %8 : vector<1x64xf32> to vector<8x64xf32>
    %10 = arith.addf %7, %9 : vector<8x64xf32>
    %11 = arith.truncf %10 : vector<8x64xf32> to vector<8x64xbf16>
    %12 = vector.extract_strided_slice %11 {offsets = [0, 0], sizes = [8, 32], strides = [1, 1]} : vector<8x64xbf16> to vector<8x32xbf16>
    %13 = vector.extract_strided_slice %11 {offsets = [0, 32], sizes = [8, 32], strides = [1, 1]} : vector<8x64xbf16> to vector<8x32xbf16>
    %c0_7 = arith.constant 0 : index
    %c0_8 = arith.constant 0 : index
    %14 = vector.load %arg12[%c0_7, %c0_8] : memref<8x32xbf16, #tpu.memory_space<vmem>>, vector<8x32xbf16>
    %15 = vector.extract_strided_slice %14 {offsets = [0, 0], sizes = [8, 4], strides = [1, 1]} : vector<8x32xbf16> to vector<8x4xbf16>
    %16 = vector.extract_strided_slice %12 {offsets = [0, 0], sizes = [8, 4], strides = [1, 1]} : vector<8x32xbf16> to vector<8x4xbf16>
    %17 = vector.extract_strided_slice %13 {offsets = [0, 0], sizes = [8, 4], strides = [1, 1]} : vector<8x32xbf16> to vector<8x4xbf16>
    %cst_9 = arith.constant dense<0.000000e+00> : vector<8x8xf32>
    %18 = tpu.matmul %15, %16, %cst_9 {dimension_numbers = #tpu.dot_dimension_numbers<[1], [1], [0], [0], [0, 0, 1, 0], [], []>} : vector<8x4xbf16>, vector<8x4xbf16>, vector<8x8xf32> -> vector<8x8xf32>
    %c0_10 = arith.constant 0 : index
    %c0_11 = arith.constant 0 : index
    %c0_12 = arith.constant 0 : index
    %19 = vector.load %arg13[%c0_10, %c0_11, %c0_12] : memref<8x8x1xf32, #tpu.memory_space<vmem>>, vector<1x8x1xf32>
    %20 = vector.shape_cast %19 : vector<1x8x1xf32> to vector<8x1xf32>
    %cst_13 = arith.constant dense<0xFF800000> : vector<8xf32>
    %21 = vector.multi_reduction <maximumf>, %18, %cst_13 [1] : vector<8x8xf32> to vector<8xf32>
    %22 = vector.shape_cast %21 : vector<8xf32> to vector<8x1xf32>
    %23 = arith.maximumf %20, %22 : vector<8x1xf32>
    %24 = arith.subf %20, %23 : vector<8x1xf32>
    %25 = math.exp %24 : vector<8x1xf32>
    %26 = vector.broadcast %23 : vector<8x1xf32> to vector<8x8xf32>
    %27 = arith.subf %18, %26 : vector<8x8xf32>
    %28 = math.exp %27 : vector<8x8xf32>
    %c0_14 = arith.constant 0 : index
    %c0_15 = arith.constant 0 : index
    %c0_16 = arith.constant 0 : index
    %29 = vector.load %arg14[%c0_14, %c0_15, %c0_16] : memref<8x8x1xf32, #tpu.memory_space<vmem>>, vector<1x8x1xf32>
    %30 = vector.shape_cast %29 : vector<1x8x1xf32> to vector<8x1xf32>
    %31 = arith.mulf %25, %30 : vector<8x1xf32>
    %cst_17 = arith.constant dense<0.000000e+00> : vector<8xf32>
    %32 = vector.multi_reduction <add>, %28, %cst_17 [1] : vector<8x8xf32> to vector<8xf32>
    %33 = vector.shape_cast %32 : vector<8xf32> to vector<8x1xf32>
    %34 = arith.addf %31, %33 : vector<8x1xf32>
    %c0_18 = arith.constant 0 : index
    %c0_19 = arith.constant 0 : index
    %c0_20 = arith.constant 0 : index
    %35 = vector.load %arg14[%c0_18, %c0_19, %c0_20] : memref<8x8x1xf32, #tpu.memory_space<vmem>>, vector<1x8x1xf32>
    %36 = vector.shape_cast %35 : vector<1x8x1xf32> to vector<8x1xf32>
    %37 = vector.shape_cast %34 : vector<8x1xf32> to vector<1x8x1xf32>
    tpu.vector_store %arg14[%c0_18, %c0_19, %c0_20], %37 {strides = array<i32>} : memref<8x8x1xf32, #tpu.memory_space<vmem>>, vector<1x8x1xf32>,
    %c0_21 = arith.constant 0 : index
    %c0_22 = arith.constant 0 : index
    %c0_23 = arith.constant 0 : index
    %38 = vector.load %arg13[%c0_21, %c0_22, %c0_23] : memref<8x8x1xf32, #tpu.memory_space<vmem>>, vector<1x8x1xf32>
    %39 = vector.shape_cast %38 : vector<1x8x1xf32> to vector<8x1xf32>
    %40 = vector.shape_cast %23 : vector<8x1xf32> to vector<1x8x1xf32>
    tpu.vector_store %arg13[%c0_21, %c0_22, %c0_23], %40 {strides = array<i32>} : memref<8x8x1xf32, #tpu.memory_space<vmem>>, vector<1x8x1xf32>,
    %c0_24 = arith.constant 0 : index
    %c0_25 = arith.constant 0 : index
    %41 = vector.load %arg15[%c0_24, %c0_25] : memref<8x32xf32, #tpu.memory_space<vmem>>, vector<8x4xf32>
    %42 = vector.broadcast %25 : vector<8x1xf32> to vector<8x4xf32>
    %43 = arith.mulf %42, %41 : vector<8x4xf32>
    %44 = arith.truncf %28 : vector<8x8xf32> to vector<8x8xbf16>
    %cst_26 = arith.constant dense<0.000000e+00> : vector<8x4xf32>
    %45 = tpu.matmul %44, %17, %cst_26 {dimension_numbers = #tpu.dot_dimension_numbers<[1], [0], [0], [1], [0, 0, 1, 1], [], []>} : vector<8x8xbf16>, vector<8x4xbf16>, vector<8x4xf32> -> vector<8x4xf32>
    %46 = arith.addf %43, %45 : vector<8x4xf32>
    %c0_27 = arith.constant 0 : index
    %c0_28 = arith.constant 0 : index
    %47 = vector.load %arg15[%c0_27, %c0_28] : memref<8x32xf32, #tpu.memory_space<vmem>>, vector<8x4xf32>
    tpu.vector_store %arg15[%c0_27, %c0_28], %46 {strides = array<i32>} : memref<8x32xf32, #tpu.memory_space<vmem>>, vector<8x4xf32>,
    %48 = vector.extract_strided_slice %14 {offsets = [0, 4], sizes = [8, 4], strides = [1, 1]} : vector<8x32xbf16> to vector<8x4xbf16>
    %49 = vector.extract_strided_slice %12 {offsets = [0, 4], sizes = [8, 4], strides = [1, 1]} : vector<8x32xbf16> to vector<8x4xbf16>
    %50 = vector.extract_strided_slice %13 {offsets = [0, 4], sizes = [8, 4], strides = [1, 1]} : vector<8x32xbf16> to vector<8x4xbf16>
    %cst_29 = arith.constant dense<0.000000e+00> : vector<8x8xf32>
    %51 = tpu.matmul %48, %49, %cst_29 {dimension_numbers = #tpu.dot_dimension_numbers<[1], [1], [0], [0], [0, 0, 1, 0], [], []>} : vector<8x4xbf16>, vector<8x4xbf16>, vector<8x8xf32> -> vector<8x8xf32>
    %c1 = arith.constant 1 : index
    %c0_30 = arith.constant 0 : index
    %c0_31 = arith.constant 0 : index
    %52 = vector.load %arg13[%c1, %c0_30, %c0_31] : memref<8x8x1xf32, #tpu.memory_space<vmem>>, vector<1x8x1xf32>
    %53 = vector.shape_cast %52 : vector<1x8x1xf32> to vector<8x1xf32>
    %cst_32 = arith.constant dense<0xFF800000> : vector<8xf32>
    %54 = vector.multi_reduction <maximumf>, %51, %cst_32 [1] : vector<8x8xf32> to vector<8xf32>
    %55 = vector.shape_cast %54 : vector<8xf32> to vector<8x1xf32>
    %56 = arith.maximumf %53, %55 : vector<8x1xf32>
    %57 = arith.subf %53, %56 : vector<8x1xf32>
    %58 = math.exp %57 : vector<8x1xf32>
    %59 = vector.broadcast %56 : vector<8x1xf32> to vector<8x8xf32>
    %60 = arith.subf %51, %59 : vector<8x8xf32>
    %61 = math.exp %60 : vector<8x8xf32>
    %c1_33 = arith.constant 1 : index
    %c0_34 = arith.constant 0 : index
    %c0_35 = arith.constant 0 : index
    %62 = vector.load %arg14[%c1_33, %c0_34, %c0_35] : memref<8x8x1xf32, #tpu.memory_space<vmem>>, vector<1x8x1xf32>
    %63 = vector.shape_cast %62 : vector<1x8x1xf32> to vector<8x1xf32>
    %64 = arith.mulf %58, %63 : vector<8x1xf32>
    %cst_36 = arith.constant dense<0.000000e+00> : vector<8xf32>
    %65 = vector.multi_reduction <add>, %61, %cst_36 [1] : vector<8x8xf32> to vector<8xf32>
    %66 = vector.shape_cast %65 : vector<8xf32> to vector<8x1xf32>
    %67 = arith.addf %64, %66 : vector<8x1xf32>
    %c1_37 = arith.constant 1 : index
    %c0_38 = arith.constant 0 : index
    %c0_39 = arith.constant 0 : index
    %68 = vector.load %arg14[%c1_37, %c0_38, %c0_39] : memref<8x8x1xf32, #tpu.memory_space<vmem>>, vector<1x8x1xf32>
    %69 = vector.shape_cast %68 : vector<1x8x1xf32> to vector<8x1xf32>
    %70 = vector.shape_cast %67 : vector<8x1xf32> to vector<1x8x1xf32>
    tpu.vector_store %arg14[%c1_37, %c0_38, %c0_39], %70 {strides = array<i32>} : memref<8x8x1xf32, #tpu.memory_space<vmem>>, vector<1x8x1xf32>,
    %c1_40 = arith.constant 1 : index
    %c0_41 = arith.constant 0 : index
    %c0_42 = arith.constant 0 : index
    %71 = vector.load %arg13[%c1_40, %c0_41, %c0_42] : memref<8x8x1xf32, #tpu.memory_space<vmem>>, vector<1x8x1xf32>
    %72 = vector.shape_cast %71 : vector<1x8x1xf32> to vector<8x1xf32>
    %73 = vector.shape_cast %56 : vector<8x1xf32> to vector<1x8x1xf32>
    tpu.vector_store %arg13[%c1_40, %c0_41, %c0_42], %73 {strides = array<i32>} : memref<8x8x1xf32, #tpu.memory_space<vmem>>, vector<1x8x1xf32>,
    %c0_43 = arith.constant 0 : index
    %c4 = arith.constant 4 : index
    %74 = vector.load %arg15[%c0_43, %c4] : memref<8x32xf32, #tpu.memory_space<vmem>>, vector<8x4xf32>
    %75 = vector.broadcast %58 : vector<8x1xf32> to vector<8x4xf32>
    %76 = arith.mulf %75, %74 : vector<8x4xf32>
    %77 = arith.truncf %61 : vector<8x8xf32> to vector<8x8xbf16>
    %cst_44 = arith.constant dense<0.000000e+00> : vector<8x4xf32>
    %78 = tpu.matmul %77, %50, %cst_44 {dimension_numbers = #tpu.dot_dimension_numbers<[1], [0], [0], [1], [0, 0, 1, 1], [], []>} : vector<8x8xbf16>, vector<8x4xbf16>, vector<8x4xf32> -> vector<8x4xf32>
    %79 = arith.addf %76, %78 : vector<8x4xf32>
    %c0_45 = arith.constant 0 : index
    %c4_46 = arith.constant 4 : index
    %80 = vector.load %arg15[%c0_45, %c4_46] : memref<8x32xf32, #tpu.memory_space<vmem>>, vector<8x4xf32>
    tpu.vector_store %arg15[%c0_45, %c4_46], %79 {strides = array<i32>} : memref<8x32xf32, #tpu.memory_space<vmem>>, vector<8x4xf32>,
    %81 = vector.extract_strided_slice %14 {offsets = [0, 8], sizes = [8, 4], strides = [1, 1]} : vector<8x32xbf16> to vector<8x4xbf16>
    %82 = vector.extract_strided_slice %12 {offsets = [0, 8], sizes = [8, 4], strides = [1, 1]} : vector<8x32xbf16> to vector<8x4xbf16>
    %83 = vector.extract_strided_slice %13 {offsets = [0, 8], sizes = [8, 4], strides = [1, 1]} : vector<8x32xbf16> to vector<8x4xbf16>
    %cst_47 = arith.constant dense<0.000000e+00> : vector<8x8xf32>
    %84 = tpu.matmul %81, %82, %cst_47 {dimension_numbers = #tpu.dot_dimension_numbers<[1], [1], [0], [0], [0, 0, 1, 0], [], []>} : vector<8x4xbf16>, vector<8x4xbf16>, vector<8x8xf32> -> vector<8x8xf32>
    %c2 = arith.constant 2 : index
    %c0_48 = arith.constant 0 : index
    %c0_49 = arith.constant 0 : index
    %85 = vector.load %arg13[%c2, %c0_48, %c0_49] : memref<8x8x1xf32, #tpu.memory_space<vmem>>, vector<1x8x1xf32>
    %86 = vector.shape_cast %85 : vector<1x8x1xf32> to vector<8x1xf32>
    %cst_50 = arith.constant dense<0xFF800000> : vector<8xf32>
    %87 = vector.multi_reduction <maximumf>, %84, %cst_50 [1] : vector<8x8xf32> to vector<8xf32>
    %88 = vector.shape_cast %87 : vector<8xf32> to vector<8x1xf32>
    %89 = arith.maximumf %86, %88 : vector<8x1xf32>
    %90 = arith.subf %86, %89 : vector<8x1xf32>
    %91 = math.exp %90 : vector<8x1xf32>
    %92 = vector.broadcast %89 : vector<8x1xf32> to vector<8x8xf32>
    %93 = arith.subf %84, %92 : vector<8x8xf32>
    %94 = math.exp %93 : vector<8x8xf32>
    %c2_51 = arith.constant 2 : index
    %c0_52 = arith.constant 0 : index
    %c0_53 = arith.constant 0 : index
    %95 = vector.load %arg14[%c2_51, %c0_52, %c0_53] : memref<8x8x1xf32, #tpu.memory_space<vmem>>, vector<1x8x1xf32>
    %96 = vector.shape_cast %95 : vector<1x8x1xf32> to vector<8x1xf32>
    %97 = arith.mulf %91, %96 : vector<8x1xf32>
    %cst_54 = arith.constant dense<0.000000e+00> : vector<8xf32>
    %98 = vector.multi_reduction <add>, %94, %cst_54 [1] : vector<8x8xf32> to vector<8xf32>
    %99 = vector.shape_cast %98 : vector<8xf32> to vector<8x1xf32>
    %100 = arith.addf %97, %99 : vector<8x1xf32>
    %c2_55 = arith.constant 2 : index
    %c0_56 = arith.constant 0 : index
    %c0_57 = arith.constant 0 : index
    %101 = vector.load %arg14[%c2_55, %c0_56, %c0_57] : memref<8x8x1xf32, #tpu.memory_space<vmem>>, vector<1x8x1xf32>
    %102 = vector.shape_cast %101 : vector<1x8x1xf32> to vector<8x1xf32>
    %103 = vector.shape_cast %100 : vector<8x1xf32> to vector<1x8x1xf32>
    tpu.vector_store %arg14[%c2_55, %c0_56, %c0_57], %103 {strides = array<i32>} : memref<8x8x1xf32, #tpu.memory_space<vmem>>, vector<1x8x1xf32>,
    %c2_58 = arith.constant 2 : index
    %c0_59 = arith.constant 0 : index
    %c0_60 = arith.constant 0 : index
    %104 = vector.load %arg13[%c2_58, %c0_59, %c0_60] : memref<8x8x1xf32, #tpu.memory_space<vmem>>, vector<1x8x1xf32>
    %105 = vector.shape_cast %104 : vector<1x8x1xf32> to vector<8x1xf32>
    %106 = vector.shape_cast %89 : vector<8x1xf32> to vector<1x8x1xf32>
    tpu.vector_store %arg13[%c2_58, %c0_59, %c0_60], %106 {strides = array<i32>} : memref<8x8x1xf32, #tpu.memory_space<vmem>>, vector<1x8x1xf32>,
    %c0_61 = arith.constant 0 : index
    %c8 = arith.constant 8 : index
    %107 = vector.load %arg15[%c0_61, %c8] : memref<8x32xf32, #tpu.memory_space<vmem>>, vector<8x4xf32>
    %108 = vector.broadcast %91 : vector<8x1xf32> to vector<8x4xf32>
    %109 = arith.mulf %108, %107 : vector<8x4xf32>
    %110 = arith.truncf %94 : vector<8x8xf32> to vector<8x8xbf16>
    %cst_62 = arith.constant dense<0.000000e+00> : vector<8x4xf32>
    %111 = tpu.matmul %110, %83, %cst_62 {dimension_numbers = #tpu.dot_dimension_numbers<[1], [0], [0], [1], [0, 0, 1, 1], [], []>} : vector<8x8xbf16>, vector<8x4xbf16>, vector<8x4xf32> -> vector<8x4xf32>
    %112 = arith.addf %109, %111 : vector<8x4xf32>
    %c0_63 = arith.constant 0 : index
    %c8_64 = arith.constant 8 : index
    %113 = vector.load %arg15[%c0_63, %c8_64] : memref<8x32xf32, #tpu.memory_space<vmem>>, vector<8x4xf32>
    tpu.vector_store %arg15[%c0_63, %c8_64], %112 {strides = array<i32>} : memref<8x32xf32, #tpu.memory_space<vmem>>, vector<8x4xf32>,
    %114 = vector.extract_strided_slice %14 {offsets = [0, 12], sizes = [8, 4], strides = [1, 1]} : vector<8x32xbf16> to vector<8x4xbf16>
    %115 = vector.extract_strided_slice %12 {offsets = [0, 12], sizes = [8, 4], strides = [1, 1]} : vector<8x32xbf16> to vector<8x4xbf16>
    %116 = vector.extract_strided_slice %13 {offsets = [0, 12], sizes = [8, 4], strides = [1, 1]} : vector<8x32xbf16> to vector<8x4xbf16>
    %cst_65 = arith.constant dense<0.000000e+00> : vector<8x8xf32>
    %117 = tpu.matmul %114, %115, %cst_65 {dimension_numbers = #tpu.dot_dimension_numbers<[1], [1], [0], [0], [0, 0, 1, 0], [], []>} : vector<8x4xbf16>, vector<8x4xbf16>, vector<8x8xf32> -> vector<8x8xf32>
    %c3 = arith.constant 3 : index
    %c0_66 = arith.constant 0 : index
    %c0_67 = arith.constant 0 : index
    %118 = vector.load %arg13[%c3, %c0_66, %c0_67] : memref<8x8x1xf32, #tpu.memory_space<vmem>>, vector<1x8x1xf32>
    %119 = vector.shape_cast %118 : vector<1x8x1xf32> to vector<8x1xf32>
    %cst_68 = arith.constant dense<0xFF800000> : vector<8xf32>
    %120 = vector.multi_reduction <maximumf>, %117, %cst_68 [1] : vector<8x8xf32> to vector<8xf32>
    %121 = vector.shape_cast %120 : vector<8xf32> to vector<8x1xf32>
    %122 = arith.maximumf %119, %121 : vector<8x1xf32>
    %123 = arith.subf %119, %122 : vector<8x1xf32>
    %124 = math.exp %123 : vector<8x1xf32>
    %125 = vector.broadcast %122 : vector<8x1xf32> to vector<8x8xf32>
    %126 = arith.subf %117, %125 : vector<8x8xf32>
    %127 = math.exp %126 : vector<8x8xf32>
    %c3_69 = arith.constant 3 : index
    %c0_70 = arith.constant 0 : index
    %c0_71 = arith.constant 0 : index
    %128 = vector.load %arg14[%c3_69, %c0_70, %c0_71] : memref<8x8x1xf32, #tpu.memory_space<vmem>>, vector<1x8x1xf32>
    %129 = vector.shape_cast %128 : vector<1x8x1xf32> to vector<8x1xf32>
    %130 = arith.mulf %124, %129 : vector<8x1xf32>
    %cst_72 = arith.constant dense<0.000000e+00> : vector<8xf32>
    %131 = vector.multi_reduction <add>, %127, %cst_72 [1] : vector<8x8xf32> to vector<8xf32>
    %132 = vector.shape_cast %131 : vector<8xf32> to vector<8x1xf32>
    %133 = arith.addf %130, %132 : vector<8x1xf32>
    %c3_73 = arith.constant 3 : index
    %c0_74 = arith.constant 0 : index
    %c0_75 = arith.constant 0 : index
    %134 = vector.load %arg14[%c3_73, %c0_74, %c0_75] : memref<8x8x1xf32, #tpu.memory_space<vmem>>, vector<1x8x1xf32>
    %135 = vector.shape_cast %134 : vector<1x8x1xf32> to vector<8x1xf32>
    %136 = vector.shape_cast %133 : vector<8x1xf32> to vector<1x8x1xf32>
    tpu.vector_store %arg14[%c3_73, %c0_74, %c0_75], %136 {strides = array<i32>} : memref<8x8x1xf32, #tpu.memory_space<vmem>>, vector<1x8x1xf32>,
    %c3_76 = arith.constant 3 : index
    %c0_77 = arith.constant 0 : index
    %c0_78 = arith.constant 0 : index
    %137 = vector.load %arg13[%c3_76, %c0_77, %c0_78] : memref<8x8x1xf32, #tpu.memory_space<vmem>>, vector<1x8x1xf32>
    %138 = vector.shape_cast %137 : vector<1x8x1xf32> to vector<8x1xf32>
    %139 = vector.shape_cast %122 : vector<8x1xf32> to vector<1x8x1xf32>
    tpu.vector_store %arg13[%c3_76, %c0_77, %c0_78], %139 {strides = array<i32>} : memref<8x8x1xf32, #tpu.memory_space<vmem>>, vector<1x8x1xf32>,
    %c0_79 = arith.constant 0 : index
    %c12 = arith.constant 12 : index
    %140 = vector.load %arg15[%c0_79, %c12] : memref<8x32xf32, #tpu.memory_space<vmem>>, vector<8x4xf32>
    %141 = vector.broadcast %124 : vector<8x1xf32> to vector<8x4xf32>
    %142 = arith.mulf %141, %140 : vector<8x4xf32>
    %143 = arith.truncf %127 : vector<8x8xf32> to vector<8x8xbf16>
    %cst_80 = arith.constant dense<0.000000e+00> : vector<8x4xf32>
    %144 = tpu.matmul %143, %116, %cst_80 {dimension_numbers = #tpu.dot_dimension_numbers<[1], [0], [0], [1], [0, 0, 1, 1], [], []>} : vector<8x8xbf16>, vector<8x4xbf16>, vector<8x4xf32> -> vector<8x4xf32>
    %145 = arith.addf %142, %144 : vector<8x4xf32>
    %c0_81 = arith.constant 0 : index
    %c12_82 = arith.constant 12 : index
    %146 = vector.load %arg15[%c0_81, %c12_82] : memref<8x32xf32, #tpu.memory_space<vmem>>, vector<8x4xf32>
    tpu.vector_store %arg15[%c0_81, %c12_82], %145 {strides = array<i32>} : memref<8x32xf32, #tpu.memory_space<vmem>>, vector<8x4xf32>,
    %147 = vector.extract_strided_slice %14 {offsets = [0, 16], sizes = [8, 4], strides = [1, 1]} : vector<8x32xbf16> to vector<8x4xbf16>
    %148 = vector.extract_strided_slice %12 {offsets = [0, 16], sizes = [8, 4], strides = [1, 1]} : vector<8x32xbf16> to vector<8x4xbf16>
    %149 = vector.extract_strided_slice %13 {offsets = [0, 16], sizes = [8, 4], strides = [1, 1]} : vector<8x32xbf16> to vector<8x4xbf16>
    %cst_83 = arith.constant dense<0.000000e+00> : vector<8x8xf32>
    %150 = tpu.matmul %147, %148, %cst_83 {dimension_numbers = #tpu.dot_dimension_numbers<[1], [1], [0], [0], [0, 0, 1, 0], [], []>} : vector<8x4xbf16>, vector<8x4xbf16>, vector<8x8xf32> -> vector<8x8xf32>
    %c4_84 = arith.constant 4 : index
    %c0_85 = arith.constant 0 : index
    %c0_86 = arith.constant 0 : index
    %151 = vector.load %arg13[%c4_84, %c0_85, %c0_86] : memref<8x8x1xf32, #tpu.memory_space<vmem>>, vector<1x8x1xf32>
    %152 = vector.shape_cast %151 : vector<1x8x1xf32> to vector<8x1xf32>
    %cst_87 = arith.constant dense<0xFF800000> : vector<8xf32>
    %153 = vector.multi_reduction <maximumf>, %150, %cst_87 [1] : vector<8x8xf32> to vector<8xf32>
    %154 = vector.shape_cast %153 : vector<8xf32> to vector<8x1xf32>
    %155 = arith.maximumf %152, %154 : vector<8x1xf32>
    %156 = arith.subf %152, %155 : vector<8x1xf32>
    %157 = math.exp %156 : vector<8x1xf32>
    %158 = vector.broadcast %155 : vector<8x1xf32> to vector<8x8xf32>
    %159 = arith.subf %150, %158 : vector<8x8xf32>
    %160 = math.exp %159 : vector<8x8xf32>
    %c4_88 = arith.constant 4 : index
    %c0_89 = arith.constant 0 : index
    %c0_90 = arith.constant 0 : index
    %161 = vector.load %arg14[%c4_88, %c0_89, %c0_90] : memref<8x8x1xf32, #tpu.memory_space<vmem>>, vector<1x8x1xf32>
    %162 = vector.shape_cast %161 : vector<1x8x1xf32> to vector<8x1xf32>
    %163 = arith.mulf %157, %162 : vector<8x1xf32>
    %cst_91 = arith.constant dense<0.000000e+00> : vector<8xf32>
    %164 = vector.multi_reduction <add>, %160, %cst_91 [1] : vector<8x8xf32> to vector<8xf32>
    %165 = vector.shape_cast %164 : vector<8xf32> to vector<8x1xf32>
    %166 = arith.addf %163, %165 : vector<8x1xf32>
    %c4_92 = arith.constant 4 : index
    %c0_93 = arith.constant 0 : index
    %c0_94 = arith.constant 0 : index
    %167 = vector.load %arg14[%c4_92, %c0_93, %c0_94] : memref<8x8x1xf32, #tpu.memory_space<vmem>>, vector<1x8x1xf32>
    %168 = vector.shape_cast %167 : vector<1x8x1xf32> to vector<8x1xf32>
    %169 = vector.shape_cast %166 : vector<8x1xf32> to vector<1x8x1xf32>
    tpu.vector_store %arg14[%c4_92, %c0_93, %c0_94], %169 {strides = array<i32>} : memref<8x8x1xf32, #tpu.memory_space<vmem>>, vector<1x8x1xf32>,
    %c4_95 = arith.constant 4 : index
    %c0_96 = arith.constant 0 : index
    %c0_97 = arith.constant 0 : index
    %170 = vector.load %arg13[%c4_95, %c0_96, %c0_97] : memref<8x8x1xf32, #tpu.memory_space<vmem>>, vector<1x8x1xf32>
    %171 = vector.shape_cast %170 : vector<1x8x1xf32> to vector<8x1xf32>
    %172 = vector.shape_cast %155 : vector<8x1xf32> to vector<1x8x1xf32>
    tpu.vector_store %arg13[%c4_95, %c0_96, %c0_97], %172 {strides = array<i32>} : memref<8x8x1xf32, #tpu.memory_space<vmem>>, vector<1x8x1xf32>,
    %c0_98 = arith.constant 0 : index
    %c16 = arith.constant 16 : index
    %173 = vector.load %arg15[%c0_98, %c16] : memref<8x32xf32, #tpu.memory_space<vmem>>, vector<8x4xf32>
    %174 = vector.broadcast %157 : vector<8x1xf32> to vector<8x4xf32>
    %175 = arith.mulf %174, %173 : vector<8x4xf32>
    %176 = arith.truncf %160 : vector<8x8xf32> to vector<8x8xbf16>
    %cst_99 = arith.constant dense<0.000000e+00> : vector<8x4xf32>
    %177 = tpu.matmul %176, %149, %cst_99 {dimension_numbers = #tpu.dot_dimension_numbers<[1], [0], [0], [1], [0, 0, 1, 1], [], []>} : vector<8x8xbf16>, vector<8x4xbf16>, vector<8x4xf32> -> vector<8x4xf32>
    %178 = arith.addf %175, %177 : vector<8x4xf32>
    %c0_100 = arith.constant 0 : index
    %c16_101 = arith.constant 16 : index
    %179 = vector.load %arg15[%c0_100, %c16_101] : memref<8x32xf32, #tpu.memory_space<vmem>>, vector<8x4xf32>
    tpu.vector_store %arg15[%c0_100, %c16_101], %178 {strides = array<i32>} : memref<8x32xf32, #tpu.memory_space<vmem>>, vector<8x4xf32>,
    %180 = vector.extract_strided_slice %14 {offsets = [0, 20], sizes = [8, 4], strides = [1, 1]} : vector<8x32xbf16> to vector<8x4xbf16>
    %181 = vector.extract_strided_slice %12 {offsets = [0, 20], sizes = [8, 4], strides = [1, 1]} : vector<8x32xbf16> to vector<8x4xbf16>
    %182 = vector.extract_strided_slice %13 {offsets = [0, 20], sizes = [8, 4], strides = [1, 1]} : vector<8x32xbf16> to vector<8x4xbf16>
    %cst_102 = arith.constant dense<0.000000e+00> : vector<8x8xf32>
    %183 = tpu.matmul %180, %181, %cst_102 {dimension_numbers = #tpu.dot_dimension_numbers<[1], [1], [0], [0], [0, 0, 1, 0], [], []>} : vector<8x4xbf16>, vector<8x4xbf16>, vector<8x8xf32> -> vector<8x8xf32>
    %c5 = arith.constant 5 : index
    %c0_103 = arith.constant 0 : index
    %c0_104 = arith.constant 0 : index
    %184 = vector.load %arg13[%c5, %c0_103, %c0_104] : memref<8x8x1xf32, #tpu.memory_space<vmem>>, vector<1x8x1xf32>
    %185 = vector.shape_cast %184 : vector<1x8x1xf32> to vector<8x1xf32>
    %cst_105 = arith.constant dense<0xFF800000> : vector<8xf32>
    %186 = vector.multi_reduction <maximumf>, %183, %cst_105 [1] : vector<8x8xf32> to vector<8xf32>
    %187 = vector.shape_cast %186 : vector<8xf32> to vector<8x1xf32>
    %188 = arith.maximumf %185, %187 : vector<8x1xf32>
    %189 = arith.subf %185, %188 : vector<8x1xf32>
    %190 = math.exp %189 : vector<8x1xf32>
    %191 = vector.broadcast %188 : vector<8x1xf32> to vector<8x8xf32>
    %192 = arith.subf %183, %191 : vector<8x8xf32>
    %193 = math.exp %192 : vector<8x8xf32>
    %c5_106 = arith.constant 5 : index
    %c0_107 = arith.constant 0 : index
    %c0_108 = arith.constant 0 : index
    %194 = vector.load %arg14[%c5_106, %c0_107, %c0_108] : memref<8x8x1xf32, #tpu.memory_space<vmem>>, vector<1x8x1xf32>
    %195 = vector.shape_cast %194 : vector<1x8x1xf32> to vector<8x1xf32>
    %196 = arith.mulf %190, %195 : vector<8x1xf32>
    %cst_109 = arith.constant dense<0.000000e+00> : vector<8xf32>
    %197 = vector.multi_reduction <add>, %193, %cst_109 [1] : vector<8x8xf32> to vector<8xf32>
    %198 = vector.shape_cast %197 : vector<8xf32> to vector<8x1xf32>
    %199 = arith.addf %196, %198 : vector<8x1xf32>
    %c5_110 = arith.constant 5 : index
    %c0_111 = arith.constant 0 : index
    %c0_112 = arith.constant 0 : index
    %200 = vector.load %arg14[%c5_110, %c0_111, %c0_112] : memref<8x8x1xf32, #tpu.memory_space<vmem>>, vector<1x8x1xf32>
    %201 = vector.shape_cast %200 : vector<1x8x1xf32> to vector<8x1xf32>
    %202 = vector.shape_cast %199 : vector<8x1xf32> to vector<1x8x1xf32>
    tpu.vector_store %arg14[%c5_110, %c0_111, %c0_112], %202 {strides = array<i32>} : memref<8x8x1xf32, #tpu.memory_space<vmem>>, vector<1x8x1xf32>,
    %c5_113 = arith.constant 5 : index
    %c0_114 = arith.constant 0 : index
    %c0_115 = arith.constant 0 : index
    %203 = vector.load %arg13[%c5_113, %c0_114, %c0_115] : memref<8x8x1xf32, #tpu.memory_space<vmem>>, vector<1x8x1xf32>
    %204 = vector.shape_cast %203 : vector<1x8x1xf32> to vector<8x1xf32>
    %205 = vector.shape_cast %188 : vector<8x1xf32> to vector<1x8x1xf32>
    tpu.vector_store %arg13[%c5_113, %c0_114, %c0_115], %205 {strides = array<i32>} : memref<8x8x1xf32, #tpu.memory_space<vmem>>, vector<1x8x1xf32>,
    %c0_116 = arith.constant 0 : index
    %c20 = arith.constant 20 : index
    %206 = vector.load %arg15[%c0_116, %c20] : memref<8x32xf32, #tpu.memory_space<vmem>>, vector<8x4xf32>
    %207 = vector.broadcast %190 : vector<8x1xf32> to vector<8x4xf32>
    %208 = arith.mulf %207, %206 : vector<8x4xf32>
    %209 = arith.truncf %193 : vector<8x8xf32> to vector<8x8xbf16>
    %cst_117 = arith.constant dense<0.000000e+00> : vector<8x4xf32>
    %210 = tpu.matmul %209, %182, %cst_117 {dimension_numbers = #tpu.dot_dimension_numbers<[1], [0], [0], [1], [0, 0, 1, 1], [], []>} : vector<8x8xbf16>, vector<8x4xbf16>, vector<8x4xf32> -> vector<8x4xf32>
    %211 = arith.addf %208, %210 : vector<8x4xf32>
    %c0_118 = arith.constant 0 : index
    %c20_119 = arith.constant 20 : index
    %212 = vector.load %arg15[%c0_118, %c20_119] : memref<8x32xf32, #tpu.memory_space<vmem>>, vector<8x4xf32>
    tpu.vector_store %arg15[%c0_118, %c20_119], %211 {strides = array<i32>} : memref<8x32xf32, #tpu.memory_space<vmem>>, vector<8x4xf32>,
    %213 = vector.extract_strided_slice %14 {offsets = [0, 24], sizes = [8, 4], strides = [1, 1]} : vector<8x32xbf16> to vector<8x4xbf16>
    %214 = vector.extract_strided_slice %12 {offsets = [0, 24], sizes = [8, 4], strides = [1, 1]} : vector<8x32xbf16> to vector<8x4xbf16>
    %215 = vector.extract_strided_slice %13 {offsets = [0, 24], sizes = [8, 4], strides = [1, 1]} : vector<8x32xbf16> to vector<8x4xbf16>
    %cst_120 = arith.constant dense<0.000000e+00> : vector<8x8xf32>
    %216 = tpu.matmul %213, %214, %cst_120 {dimension_numbers = #tpu.dot_dimension_numbers<[1], [1], [0], [0], [0, 0, 1, 0], [], []>} : vector<8x4xbf16>, vector<8x4xbf16>, vector<8x8xf32> -> vector<8x8xf32>
    %c6 = arith.constant 6 : index
    %c0_121 = arith.constant 0 : index
    %c0_122 = arith.constant 0 : index
    %217 = vector.load %arg13[%c6, %c0_121, %c0_122] : memref<8x8x1xf32, #tpu.memory_space<vmem>>, vector<1x8x1xf32>
    %218 = vector.shape_cast %217 : vector<1x8x1xf32> to vector<8x1xf32>
    %cst_123 = arith.constant dense<0xFF800000> : vector<8xf32>
    %219 = vector.multi_reduction <maximumf>, %216, %cst_123 [1] : vector<8x8xf32> to vector<8xf32>
    %220 = vector.shape_cast %219 : vector<8xf32> to vector<8x1xf32>
    %221 = arith.maximumf %218, %220 : vector<8x1xf32>
    %222 = arith.subf %218, %221 : vector<8x1xf32>
    %223 = math.exp %222 : vector<8x1xf32>
    %224 = vector.broadcast %221 : vector<8x1xf32> to vector<8x8xf32>
    %225 = arith.subf %216, %224 : vector<8x8xf32>
    %226 = math.exp %225 : vector<8x8xf32>
    %c6_124 = arith.constant 6 : index
    %c0_125 = arith.constant 0 : index
    %c0_126 = arith.constant 0 : index
    %227 = vector.load %arg14[%c6_124, %c0_125, %c0_126] : memref<8x8x1xf32, #tpu.memory_space<vmem>>, vector<1x8x1xf32>
    %228 = vector.shape_cast %227 : vector<1x8x1xf32> to vector<8x1xf32>
    %229 = arith.mulf %223, %228 : vector<8x1xf32>
    %cst_127 = arith.constant dense<0.000000e+00> : vector<8xf32>
    %230 = vector.multi_reduction <add>, %226, %cst_127 [1] : vector<8x8xf32> to vector<8xf32>
    %231 = vector.shape_cast %230 : vector<8xf32> to vector<8x1xf32>
    %232 = arith.addf %229, %231 : vector<8x1xf32>
    %c6_128 = arith.constant 6 : index
    %c0_129 = arith.constant 0 : index
    %c0_130 = arith.constant 0 : index
    %233 = vector.load %arg14[%c6_128, %c0_129, %c0_130] : memref<8x8x1xf32, #tpu.memory_space<vmem>>, vector<1x8x1xf32>
    %234 = vector.shape_cast %233 : vector<1x8x1xf32> to vector<8x1xf32>
    %235 = vector.shape_cast %232 : vector<8x1xf32> to vector<1x8x1xf32>
    tpu.vector_store %arg14[%c6_128, %c0_129, %c0_130], %235 {strides = array<i32>} : memref<8x8x1xf32, #tpu.memory_space<vmem>>, vector<1x8x1xf32>,
    %c6_131 = arith.constant 6 : index
    %c0_132 = arith.constant 0 : index
    %c0_133 = arith.constant 0 : index
    %236 = vector.load %arg13[%c6_131, %c0_132, %c0_133] : memref<8x8x1xf32, #tpu.memory_space<vmem>>, vector<1x8x1xf32>
    %237 = vector.shape_cast %236 : vector<1x8x1xf32> to vector<8x1xf32>
    %238 = vector.shape_cast %221 : vector<8x1xf32> to vector<1x8x1xf32>
    tpu.vector_store %arg13[%c6_131, %c0_132, %c0_133], %238 {strides = array<i32>} : memref<8x8x1xf32, #tpu.memory_space<vmem>>, vector<1x8x1xf32>,
    %c0_134 = arith.constant 0 : index
    %c24 = arith.constant 24 : index
    %239 = vector.load %arg15[%c0_134, %c24] : memref<8x32xf32, #tpu.memory_space<vmem>>, vector<8x4xf32>
    %240 = vector.broadcast %223 : vector<8x1xf32> to vector<8x4xf32>
    %241 = arith.mulf %240, %239 : vector<8x4xf32>
    %242 = arith.truncf %226 : vector<8x8xf32> to vector<8x8xbf16>
    %cst_135 = arith.constant dense<0.000000e+00> : vector<8x4xf32>
    %243 = tpu.matmul %242, %215, %cst_135 {dimension_numbers = #tpu.dot_dimension_numbers<[1], [0], [0], [1], [0, 0, 1, 1], [], []>} : vector<8x8xbf16>, vector<8x4xbf16>, vector<8x4xf32> -> vector<8x4xf32>
    %244 = arith.addf %241, %243 : vector<8x4xf32>
    %c0_136 = arith.constant 0 : index
    %c24_137 = arith.constant 24 : index
    %245 = vector.load %arg15[%c0_136, %c24_137] : memref<8x32xf32, #tpu.memory_space<vmem>>, vector<8x4xf32>
    tpu.vector_store %arg15[%c0_136, %c24_137], %244 {strides = array<i32>} : memref<8x32xf32, #tpu.memory_space<vmem>>, vector<8x4xf32>,
    %246 = vector.extract_strided_slice %14 {offsets = [0, 28], sizes = [8, 4], strides = [1, 1]} : vector<8x32xbf16> to vector<8x4xbf16>
    %247 = vector.extract_strided_slice %12 {offsets = [0, 28], sizes = [8, 4], strides = [1, 1]} : vector<8x32xbf16> to vector<8x4xbf16>
    %248 = vector.extract_strided_slice %13 {offsets = [0, 28], sizes = [8, 4], strides = [1, 1]} : vector<8x32xbf16> to vector<8x4xbf16>
    %cst_138 = arith.constant dense<0.000000e+00> : vector<8x8xf32>
    %249 = tpu.matmul %246, %247, %cst_138 {dimension_numbers = #tpu.dot_dimension_numbers<[1], [1], [0], [0], [0, 0, 1, 0], [], []>} : vector<8x4xbf16>, vector<8x4xbf16>, vector<8x8xf32> -> vector<8x8xf32>
    %c7 = arith.constant 7 : index
    %c0_139 = arith.constant 0 : index
    %c0_140 = arith.constant 0 : index
    %250 = vector.load %arg13[%c7, %c0_139, %c0_140] : memref<8x8x1xf32, #tpu.memory_space<vmem>>, vector<1x8x1xf32>
    %251 = vector.shape_cast %250 : vector<1x8x1xf32> to vector<8x1xf32>
    %cst_141 = arith.constant dense<0xFF800000> : vector<8xf32>
    %252 = vector.multi_reduction <maximumf>, %249, %cst_141 [1] : vector<8x8xf32> to vector<8xf32>
    %253 = vector.shape_cast %252 : vector<8xf32> to vector<8x1xf32>
    %254 = arith.maximumf %251, %253 : vector<8x1xf32>
    %255 = arith.subf %251, %254 : vector<8x1xf32>
    %256 = math.exp %255 : vector<8x1xf32>
    %257 = vector.broadcast %254 : vector<8x1xf32> to vector<8x8xf32>
    %258 = arith.subf %249, %257 : vector<8x8xf32>
    %259 = math.exp %258 : vector<8x8xf32>
    %c7_142 = arith.constant 7 : index
    %c0_143 = arith.constant 0 : index
    %c0_144 = arith.constant 0 : index
    %260 = vector.load %arg14[%c7_142, %c0_143, %c0_144] : memref<8x8x1xf32, #tpu.memory_space<vmem>>, vector<1x8x1xf32>
    %261 = vector.shape_cast %260 : vector<1x8x1xf32> to vector<8x1xf32>
    %262 = arith.mulf %256, %261 : vector<8x1xf32>
    %cst_145 = arith.constant dense<0.000000e+00> : vector<8xf32>
    %263 = vector.multi_reduction <add>, %259, %cst_145 [1] : vector<8x8xf32> to vector<8xf32>
    %264 = vector.shape_cast %263 : vector<8xf32> to vector<8x1xf32>
    %265 = arith.addf %262, %264 : vector<8x1xf32>
    %c7_146 = arith.constant 7 : index
    %c0_147 = arith.constant 0 : index
    %c0_148 = arith.constant 0 : index
    %266 = vector.load %arg14[%c7_146, %c0_147, %c0_148] : memref<8x8x1xf32, #tpu.memory_space<vmem>>, vector<1x8x1xf32>
    %267 = vector.shape_cast %266 : vector<1x8x1xf32> to vector<8x1xf32>
    %268 = vector.shape_cast %265 : vector<8x1xf32> to vector<1x8x1xf32>
    tpu.vector_store %arg14[%c7_146, %c0_147, %c0_148], %268 {strides = array<i32>} : memref<8x8x1xf32, #tpu.memory_space<vmem>>, vector<1x8x1xf32>,
    %c7_149 = arith.constant 7 : index
    %c0_150 = arith.constant 0 : index
    %c0_151 = arith.constant 0 : index
    %269 = vector.load %arg13[%c7_149, %c0_150, %c0_151] : memref<8x8x1xf32, #tpu.memory_space<vmem>>, vector<1x8x1xf32>
    %270 = vector.shape_cast %269 : vector<1x8x1xf32> to vector<8x1xf32>
    %271 = vector.shape_cast %254 : vector<8x1xf32> to vector<1x8x1xf32>
    tpu.vector_store %arg13[%c7_149, %c0_150, %c0_151], %271 {strides = array<i32>} : memref<8x8x1xf32, #tpu.memory_space<vmem>>, vector<1x8x1xf32>,
    %c0_152 = arith.constant 0 : index
    %c28 = arith.constant 28 : index
    %272 = vector.load %arg15[%c0_152, %c28] : memref<8x32xf32, #tpu.memory_space<vmem>>, vector<8x4xf32>
    %273 = vector.broadcast %256 : vector<8x1xf32> to vector<8x4xf32>
    %274 = arith.mulf %273, %272 : vector<8x4xf32>
    %275 = arith.truncf %259 : vector<8x8xf32> to vector<8x8xbf16>
    %cst_153 = arith.constant dense<0.000000e+00> : vector<8x4xf32>
    %276 = tpu.matmul %275, %248, %cst_153 {dimension_numbers = #tpu.dot_dimension_numbers<[1], [0], [0], [1], [0, 0, 1, 1], [], []>} : vector<8x8xbf16>, vector<8x4xbf16>, vector<8x4xf32> -> vector<8x4xf32>
    %277 = arith.addf %274, %276 : vector<8x4xf32>
    %c0_154 = arith.constant 0 : index
    %c28_155 = arith.constant 28 : index
    %278 = vector.load %arg15[%c0_154, %c28_155] : memref<8x32xf32, #tpu.memory_space<vmem>>, vector<8x4xf32>
    tpu.vector_store %arg15[%c0_154, %c28_155], %277 {strides = array<i32>} : memref<8x32xf32, #tpu.memory_space<vmem>>, vector<8x4xf32>,
    %c0_i32_156 = arith.constant 0 : i32
    %279 = arith.cmpi eq, %arg2, %c0_i32_156 : i32
    %280 = arith.extui %279 : i1 to i32
    %c0_i32_157 = arith.constant 0 : i32
    %281 = arith.cmpi ne, %280, %c0_i32_157 : i32
    scf.if %281 {
      %c0_158 = arith.constant 0 : index
      %c0_159 = arith.constant 0 : index
      %282 = vector.load %arg15[%c0_158, %c0_159] : memref<8x32xf32, #tpu.memory_space<vmem>>, vector<8x4xf32>
      %c0_160 = arith.constant 0 : index
      %c0_161 = arith.constant 0 : index
      %c0_162 = arith.constant 0 : index
      %283 = vector.load %arg14[%c0_160, %c0_161, %c0_162] : memref<8x8x1xf32, #tpu.memory_space<vmem>>, vector<1x8x1xf32>
      %284 = vector.shape_cast %283 : vector<1x8x1xf32> to vector<8x1xf32>
      %285 = tpu.reciprocal %284 {approx = true} : vector<8x1xf32> -> vector<8x1xf32>
      %286 = vector.broadcast %285 : vector<8x1xf32> to vector<8x4xf32>
      %287 = arith.mulf %282, %286 : vector<8x4xf32>
      %c0_163 = arith.constant 0 : index
      %c0_164 = arith.constant 0 : index
      %288 = vector.load %arg15[%c0_163, %c0_164] : memref<8x32xf32, #tpu.memory_space<vmem>>, vector<8x4xf32>
      tpu.vector_store %arg15[%c0_163, %c0_164], %287 {strides = array<i32>} : memref<8x32xf32, #tpu.memory_space<vmem>>, vector<8x4xf32>,
      %c0_165 = arith.constant 0 : index
      %c4_166 = arith.constant 4 : index
      %289 = vector.load %arg15[%c0_165, %c4_166] : memref<8x32xf32, #tpu.memory_space<vmem>>, vector<8x4xf32>
      %c1_167 = arith.constant 1 : index
      %c0_168 = arith.constant 0 : index
      %c0_169 = arith.constant 0 : index
      %290 = vector.load %arg14[%c1_167, %c0_168, %c0_169] : memref<8x8x1xf32, #tpu.memory_space<vmem>>, vector<1x8x1xf32>
      %291 = vector.shape_cast %290 : vector<1x8x1xf32> to vector<8x1xf32>
      %292 = tpu.reciprocal %291 {approx = true} : vector<8x1xf32> -> vector<8x1xf32>
      %293 = vector.broadcast %292 : vector<8x1xf32> to vector<8x4xf32>
      %294 = arith.mulf %289, %293 : vector<8x4xf32>
      %c0_170 = arith.constant 0 : index
      %c4_171 = arith.constant 4 : index
      %295 = vector.load %arg15[%c0_170, %c4_171] : memref<8x32xf32, #tpu.memory_space<vmem>>, vector<8x4xf32>
      tpu.vector_store %arg15[%c0_170, %c4_171], %294 {strides = array<i32>} : memref<8x32xf32, #tpu.memory_space<vmem>>, vector<8x4xf32>,
      %c0_172 = arith.constant 0 : index
      %c8_173 = arith.constant 8 : index
      %296 = vector.load %arg15[%c0_172, %c8_173] : memref<8x32xf32, #tpu.memory_space<vmem>>, vector<8x4xf32>
      %c2_174 = arith.constant 2 : index
      %c0_175 = arith.constant 0 : index
      %c0_176 = arith.constant 0 : index
      %297 = vector.load %arg14[%c2_174, %c0_175, %c0_176] : memref<8x8x1xf32, #tpu.memory_space<vmem>>, vector<1x8x1xf32>
      %298 = vector.shape_cast %297 : vector<1x8x1xf32> to vector<8x1xf32>
      %299 = tpu.reciprocal %298 {approx = true} : vector<8x1xf32> -> vector<8x1xf32>
      %300 = vector.broadcast %299 : vector<8x1xf32> to vector<8x4xf32>
      %301 = arith.mulf %296, %300 : vector<8x4xf32>
      %c0_177 = arith.constant 0 : index
      %c8_178 = arith.constant 8 : index
      %302 = vector.load %arg15[%c0_177, %c8_178] : memref<8x32xf32, #tpu.memory_space<vmem>>, vector<8x4xf32>
      tpu.vector_store %arg15[%c0_177, %c8_178], %301 {strides = array<i32>} : memref<8x32xf32, #tpu.memory_space<vmem>>, vector<8x4xf32>,
      %c0_179 = arith.constant 0 : index
      %c12_180 = arith.constant 12 : index
      %303 = vector.load %arg15[%c0_179, %c12_180] : memref<8x32xf32, #tpu.memory_space<vmem>>, vector<8x4xf32>
      %c3_181 = arith.constant 3 : index
      %c0_182 = arith.constant 0 : index
      %c0_183 = arith.constant 0 : index
      %304 = vector.load %arg14[%c3_181, %c0_182, %c0_183] : memref<8x8x1xf32, #tpu.memory_space<vmem>>, vector<1x8x1xf32>
      %305 = vector.shape_cast %304 : vector<1x8x1xf32> to vector<8x1xf32>
      %306 = tpu.reciprocal %305 {approx = true} : vector<8x1xf32> -> vector<8x1xf32>
      %307 = vector.broadcast %306 : vector<8x1xf32> to vector<8x4xf32>
      %308 = arith.mulf %303, %307 : vector<8x4xf32>
      %c0_184 = arith.constant 0 : index
      %c12_185 = arith.constant 12 : index
      %309 = vector.load %arg15[%c0_184, %c12_185] : memref<8x32xf32, #tpu.memory_space<vmem>>, vector<8x4xf32>
      tpu.vector_store %arg15[%c0_184, %c12_185], %308 {strides = array<i32>} : memref<8x32xf32, #tpu.memory_space<vmem>>, vector<8x4xf32>,
      %c0_186 = arith.constant 0 : index
      %c16_187 = arith.constant 16 : index
      %310 = vector.load %arg15[%c0_186, %c16_187] : memref<8x32xf32, #tpu.memory_space<vmem>>, vector<8x4xf32>
      %c4_188 = arith.constant 4 : index
      %c0_189 = arith.constant 0 : index
      %c0_190 = arith.constant 0 : index
      %311 = vector.load %arg14[%c4_188, %c0_189, %c0_190] : memref<8x8x1xf32, #tpu.memory_space<vmem>>, vector<1x8x1xf32>
      %312 = vector.shape_cast %311 : vector<1x8x1xf32> to vector<8x1xf32>
      %313 = tpu.reciprocal %312 {approx = true} : vector<8x1xf32> -> vector<8x1xf32>
      %314 = vector.broadcast %313 : vector<8x1xf32> to vector<8x4xf32>
      %315 = arith.mulf %310, %314 : vector<8x4xf32>
      %c0_191 = arith.constant 0 : index
      %c16_192 = arith.constant 16 : index
      %316 = vector.load %arg15[%c0_191, %c16_192] : memref<8x32xf32, #tpu.memory_space<vmem>>, vector<8x4xf32>
      tpu.vector_store %arg15[%c0_191, %c16_192], %315 {strides = array<i32>} : memref<8x32xf32, #tpu.memory_space<vmem>>, vector<8x4xf32>,
      %c0_193 = arith.constant 0 : index
      %c20_194 = arith.constant 20 : index
      %317 = vector.load %arg15[%c0_193, %c20_194] : memref<8x32xf32, #tpu.memory_space<vmem>>, vector<8x4xf32>
      %c5_195 = arith.constant 5 : index
      %c0_196 = arith.constant 0 : index
      %c0_197 = arith.constant 0 : index
      %318 = vector.load %arg14[%c5_195, %c0_196, %c0_197] : memref<8x8x1xf32, #tpu.memory_space<vmem>>, vector<1x8x1xf32>
      %319 = vector.shape_cast %318 : vector<1x8x1xf32> to vector<8x1xf32>
      %320 = tpu.reciprocal %319 {approx = true} : vector<8x1xf32> -> vector<8x1xf32>
      %321 = vector.broadcast %320 : vector<8x1xf32> to vector<8x4xf32>
      %322 = arith.mulf %317, %321 : vector<8x4xf32>
      %c0_198 = arith.constant 0 : index
      %c20_199 = arith.constant 20 : index
      %323 = vector.load %arg15[%c0_198, %c20_199] : memref<8x32xf32, #tpu.memory_space<vmem>>, vector<8x4xf32>
      tpu.vector_store %arg15[%c0_198, %c20_199], %322 {strides = array<i32>} : memref<8x32xf32, #tpu.memory_space<vmem>>, vector<8x4xf32>,
      %c0_200 = arith.constant 0 : index
      %c24_201 = arith.constant 24 : index
      %324 = vector.load %arg15[%c0_200, %c24_201] : memref<8x32xf32, #tpu.memory_space<vmem>>, vector<8x4xf32>
      %c6_202 = arith.constant 6 : index
      %c0_203 = arith.constant 0 : index
      %c0_204 = arith.constant 0 : index
      %325 = vector.load %arg14[%c6_202, %c0_203, %c0_204] : memref<8x8x1xf32, #tpu.memory_space<vmem>>, vector<1x8x1xf32>
      %326 = vector.shape_cast %325 : vector<1x8x1xf32> to vector<8x1xf32>
      %327 = tpu.reciprocal %326 {approx = true} : vector<8x1xf32> -> vector<8x1xf32>
      %328 = vector.broadcast %327 : vector<8x1xf32> to vector<8x4xf32>
      %329 = arith.mulf %324, %328 : vector<8x4xf32>
      %c0_205 = arith.constant 0 : index
      %c24_206 = arith.constant 24 : index
      %330 = vector.load %arg15[%c0_205, %c24_206] : memref<8x32xf32, #tpu.memory_space<vmem>>, vector<8x4xf32>
      tpu.vector_store %arg15[%c0_205, %c24_206], %329 {strides = array<i32>} : memref<8x32xf32, #tpu.memory_space<vmem>>, vector<8x4xf32>,
      %c0_207 = arith.constant 0 : index
      %c28_208 = arith.constant 28 : index
      %331 = vector.load %arg15[%c0_207, %c28_208] : memref<8x32xf32, #tpu.memory_space<vmem>>, vector<8x4xf32>
      %c7_209 = arith.constant 7 : index
      %c0_210 = arith.constant 0 : index
      %c0_211 = arith.constant 0 : index
      %332 = vector.load %arg14[%c7_209, %c0_210, %c0_211] : memref<8x8x1xf32, #tpu.memory_space<vmem>>, vector<1x8x1xf32>
      %333 = vector.shape_cast %332 : vector<1x8x1xf32> to vector<8x1xf32>
      %334 = tpu.reciprocal %333 {approx = true} : vector<8x1xf32> -> vector<8x1xf32>
      %335 = vector.broadcast %334 : vector<8x1xf32> to vector<8x4xf32>
      %336 = arith.mulf %331, %335 : vector<8x4xf32>
      %c0_212 = arith.constant 0 : index
      %c28_213 = arith.constant 28 : index
      %337 = vector.load %arg15[%c0_212, %c28_213] : memref<8x32xf32, #tpu.memory_space<vmem>>, vector<8x4xf32>
      tpu.vector_store %arg15[%c0_212, %c28_213], %336 {strides = array<i32>} : memref<8x32xf32, #tpu.memory_space<vmem>>, vector<8x4xf32>,
      %c0_214 = arith.constant 0 : index
      %c0_215 = arith.constant 0 : index
      %338 = vector.load %arg15[%c0_214, %c0_215] : memref<8x32xf32, #tpu.memory_space<vmem>>, vector<8x32xf32>
      %339 = arith.truncf %338 : vector<8x32xf32> to vector<8x32xbf16>
      %c0_216 = arith.constant 0 : index
      %c0_217 = arith.constant 0 : index
      %340 = vector.load %arg9[%c0_216, %c0_217] : memref<32x32xbf16, #tpu.memory_space<vmem>>, vector<32x32xbf16>
      %cst_218 = arith.constant dense<0.000000e+00> : vector<8x32xf32>
      %341 = tpu.matmul %339, %340, %cst_218 {dimension_numbers = #tpu.dot_dimension_numbers<[1], [0], [0], [1], [0, 0, 1, 1], [], []>} : vector<8x32xbf16>, vector<32x32xbf16>, vector<8x32xf32> -> vector<8x32xf32>
      %c0_219 = arith.constant 0 : index
      %c0_220 = arith.constant 0 : index
      %342 = vector.load %arg10[%c0_219, %c0_220] : memref<1x32xf32, #tpu.memory_space<vmem>>, vector<1x32xf32>
      %343 = vector.broadcast %342 : vector<1x32xf32> to vector<8x32xf32>
      %344 = arith.addf %341, %343 : vector<8x32xf32>
      %c0_221 = arith.constant 0 : index
      %c0_222 = arith.constant 0 : index
      %c0_223 = arith.constant 0 : index
      %345 = vector.load %arg11[%c0_221, %c0_222, %c0_223] : memref<1x8x32xf32, #tpu.memory_space<vmem>>, vector<1x8x32xf32>
      %346 = vector.shape_cast %345 : vector<1x8x32xf32> to vector<8x32xf32>
      %347 = vector.shape_cast %344 : vector<8x32xf32> to vector<1x8x32xf32>
      tpu.vector_store %arg11[%c0_221, %c0_222, %c0_223], %347 {strides = array<i32>} : memref<1x8x32xf32, #tpu.memory_space<vmem>>, vector<1x8x32xf32>,
    } else {
    }
    return
  }
  func.func @transform_0(%arg0: i32, %arg1: i32, %arg2: i32) -> (i32, i32, i32) {
    %c0_i32 = arith.constant 0 : i32
    %c0_i32_0 = arith.constant 0 : i32
    return %arg0, %arg1, %c0_i32 : i32, i32, i32
  }
  func.func @transform_1(%arg0: i32, %arg1: i32, %arg2: i32) -> (i32, i32, i32) {
    %c0_i32 = arith.constant 0 : i32
    %c0_i32_0 = arith.constant 0 : i32
    return %arg0, %arg2, %c0_i32 : i32, i32, i32
  }
  func.func @transform_2(%arg0: i32, %arg1: i32, %arg2: i32) -> (i32, i32) {
    %c0_i32 = arith.constant 0 : i32
    %c0_i32_0 = arith.constant 0 : i32
    %c0_i32_1 = arith.constant 0 : i32
    return %c0_i32, %c0_i32_0 : i32, i32
  }
  func.func @transform_3(%arg0: i32, %arg1: i32, %arg2: i32) -> (i32, i32) {
    %c0_i32 = arith.constant 0 : i32
    %c0_i32_0 = arith.constant 0 : i32
    %c0_i32_1 = arith.constant 0 : i32
    return %c0_i32, %c0_i32_0 : i32, i32
  }
  func.func @transform_4(%arg0: i32, %arg1: i32, %arg2: i32) -> (i32, i32) {
    %c0_i32 = arith.constant 0 : i32
    %c0_i32_0 = arith.constant 0 : i32
    %c0_i32_1 = arith.constant 0 : i32
    return %c0_i32, %c0_i32_0 : i32, i32
  }
  func.func @transform_5(%arg0: i32, %arg1: i32, %arg2: i32) -> (i32, i32) {
    %c0_i32 = arith.constant 0 : i32
    %c0_i32_0 = arith.constant 0 : i32
    %c0_i32_1 = arith.constant 0 : i32
    return %c0_i32, %c0_i32_0 : i32, i32
  }
  func.func @transform_6(%arg0: i32, %arg1: i32, %arg2: i32) -> (i32, i32) {
    %c0_i32 = arith.constant 0 : i32
    %c0_i32_0 = arith.constant 0 : i32
    %c0_i32_1 = arith.constant 0 : i32
    return %c0_i32, %c0_i32_0 : i32, i32
  }
  func.func @transform_7(%arg0: i32, %arg1: i32, %arg2: i32) -> (i32, i32) {
    %c0_i32 = arith.constant 0 : i32
    %c0_i32_0 = arith.constant 0 : i32
    %c0_i32_1 = arith.constant 0 : i32
    return %c0_i32, %c0_i32_0 : i32, i32
  }
  func.func @transform_8(%arg0: i32, %arg1: i32, %arg2: i32) -> (i32, i32, i32) {
    %c0_i32 = arith.constant 0 : i32
    %c0_i32_0 = arith.constant 0 : i32
    return %arg0, %arg1, %c0_i32 : i32, i32, i32
  }
}

</mosaic_0001>

<bundles_post_ra>
// kernel: tpu_custom_call.1
= control target key start
LH: loop header
LB: loop body
LE: loop exit
PB: predicated region body
PF: predicated region fallthrough
CT: control target
= control target key end

     0   :  { %s3621_s0 = inlined_call_operand.hbm [shape: f32[2,8,32], index: 0, kind: input, shape index: {}]   ;;  %s3622_s1 = inlined_call_operand.hbm [shape: f32[2,8,32], index: 1, kind: input, shape index: {}]   ;;  %s3623_s2 = inlined_call_operand.hbm [shape: bf16[32,32], index: 2, kind: input, shape index: {}]   ;;  %s3624_s3 = inlined_call_operand.hbm [shape: f32[1,32], index: 3, kind: input, shape index: {}]   ;;  %s3625_s4 = inlined_call_operand.hbm [shape: bf16[32,64], index: 4, kind: input, shape index: {}]   ;;  %s3626_s5 = inlined_call_operand.hbm [shape: f32[1,64], index: 5, kind: input, shape index: {}]   ;;  %s3627_s6 = inlined_call_operand.hbm [shape: bf16[32,32], index: 6, kind: input, shape index: {}]   ;;  %s3628_s7 = inlined_call_operand.hbm [shape: f32[1,32], index: 7, kind: input, shape index: {}]   ;;  %s3629_s8 = inlined_call_operand.hbm [shape: f32[2,8,32], index: 8, kind: output, shape index: {}]  }
   0x1   :  { %3637 = sst [smem:[#allocation29_spill]] %s3623_s2 }
   0x2   :  { %3638 = sst [smem:[#allocation30_spill]] %s3624_s3 }
   0x3   :  { %3639 = sst [smem:[#allocation31_spill]] %s3625_s4 }
   0x4   :  { %3640 = sst [smem:[#allocation32_spill]] %s3626_s5 }
   0x5   :  { %3641 = sst [smem:[#allocation33_spill]] %s3627_s6 }
   0x6   :  { %3642 = sst [smem:[#allocation34_spill]] %s3629_s8 }
   0x7   :  { %13 = vsyncpa [#allocation7], 0 }
   0x8   :  { %15 = vsyncpa [#allocation7 + $0x1], 0 }
   0x9   :  { %16 = vsyncpa [#allocation10], 0 }
   0xa   :  { %18 = vsyncpa [#allocation10 + $0x1], 0 }
   0xb   :  { %19 = vsyncpa [#allocation13], 0 }
   0xc   :  { %20 = vsyncpa [#allocation16], 0 }
   0xd   :  { %21 = vsyncpa [#allocation19], 0 }
   0xe   :  { %22 = vsyncpa [#allocation8], 0 }
   0xf   :  { %24 = vsyncpa [#allocation8 + $0x1], 0  ;;  %s2917_s27 = smov 0   ;;  %s2919_s28 = smov 0  }
  0x10   :  { %s2921_s29 = smov 0   ;;  %s2923_s30 = smov 0  }
  0x11   :  { %s2925_s9 = smov 0   ;;  %s2927_s10 = smov 0  }
  0x12 LB: > { %3643 = sst [smem:[#allocation28_spill]] %s2825_s30  ;;  %s2948_s11 = sadd.s32 4294967295, %s2833_s10   ;;  %s2833_s10 = sphi %s2927_s10, %s30_s10   ;;  %s2829_s9 = sphi %s2925_s9, %s3678_s9   ;;  %s2825_s30 = sphi %s2923_s30, %s3677_s30   ;;  %s2821_s29 = sphi %s2921_s29, %s3676_s29   ;;  %s2817_s28 = sphi %s2919_s28, %s3675_s28   ;;  %s2813_s27 = sphi %s2917_s27, %s3674_s27  }
  0x13   : > { %p2074_p0 = scmp.ge.s32.totalorder %s2833_s10, 1  ;;  %p3631_p1 = scmp.eq.s32.totalorder %s2948_s11, 0 }
  0x14   : > { %p264_p2 = scmp.lt.s32.totalorder %s2833_s10, 3  ;;  %s2835_s13 = smov [#allocation11]  }
  0x15   : > { %s276_s14 = sshll.u32 %s2835_s13, 4  ;;  %s2836_s16 = smov [#allocation12]   ;;  %s2957_s14 = int_to_ptr.vmem [resolvable:$true] %s276_s14 }
  0x16   : > { %p2953_p3 = pnand %p2074_p0, %p264_p2  ;;  %s290_s17 = sshll.u32 %s2836_s16, 4  ;;  %s2968_s17 = int_to_ptr.vmem [resolvable:$true] %s290_s17 }
  0x17   : > { %s2837_s18 = smov [#allocation15]   ;;  %s3646_s2 = sld [smem:[#allocation29_spill]] }
  0x18   : > { %s3644_s12 = scalar_select %p2953_p3, 1, 0 }
  0x19   : > { %p2320_p4 = pneg %p2953_p3  ;;  %s2970_s19 = sshll.u32 %s2837_s18, 4  ;;  %s315_s19 = int_to_ptr.vmem [resolvable:$true] %s2970_s19 }
  0x1b   : > { %p2964_p6 = pnand %p2320_p4, %p3631_p1 }
  0x1d   : > { %s2503_s22 = scalar_lea.hbm %s3646_s2, 256  ;;  %p2980_p8 = pneg %p2964_p6 }
  0x1e   : > { %p2504_p7 = scmp.ne.s32.totalorder %s3646_s2, %s2503_s22  ;;  %p2510_p11 = scmp.lt.u32.totalorder %s2503_s22, %s3646_s2 }
  0x20   : > { %p2506_p9 = pnand %p2980_p8, %p2504_p7 }
  0x22   : > { %p2507_p10 = pneg %p2506_p9 }
  0x24   : > { %p2512_p12 = pnand %p2510_p11, %p2507_p10 }
  0x26   : > { %2515 = shalt.err (!%p2512_p12)
}
  0x27   : > { %s2516_s16 = scalar_lea.vmem %s2957_s14, 256  ;;  %p2524_p4 = scmp.lt.s32.totalorder %s2957_s14, %s2957_s14 }
  0x28   : > { %p2517_p13 = scmp.ne.s32.totalorder %s2957_s14, %s2516_s16  ;;  %p2525_p5 = scmp.lt.s32.totalorder %s2516_s16, %s2516_s16 }
  0x2a   : > { %p2519_p0 = pnand %p2517_p13, %p2980_p8  ;;  %p2526_p7 = por %p2525_p5, %p2524_p4 }
  0x2c   : > { %p2520_p2 = pneg %p2519_p0 }
  0x2e   : > { %p2527_p9 = pnand %p2526_p7, %p2520_p2 }
  0x30   : > { %2530 = shalt.err (!%p2527_p9)
}
  0x31   : > { %s3633_s18 = smov 64   ;;  %s2839_s20 = smov 4  }
  0x32   : > { %2323 = dma.hbm_to_vmem [thread:$0]  (!%p2964_p6), %s3646_s2, 256, %s2957_s14, [#allocation10], %s3633_s18, %s3633_s18, %s2839_s20  }
  0x33   : > { %s3648_s3 = sld [smem:[#allocation30_spill]] }
  0x39   : > { %s2531_s26 = scalar_lea.hbm %s3648_s3, 16 }
  0x3a   : > { %p2532_p5 = scmp.ne.s32.totalorder %s3648_s3, %s2531_s26  ;;  %p2538_p12 = scmp.lt.u32.totalorder %s2531_s26, %s3648_s3 }
  0x3c   : > { %p2534_p10 = pnand %p2532_p5, %p2980_p8 }
  0x3e   : > { %p2535_p11 = pneg %p2534_p10 }
  0x40   : > { %p2540_p13 = pnand %p2538_p12, %p2535_p11 }
  0x42   : > { %2543 = shalt.err (!%p2540_p13)
}
  0x43   : > { %s2544_s14 = scalar_lea.vmem %s2968_s17, 16  ;;  %s2551_s21 = scalar_lea.vmem %s2968_s17, 32 }
  0x44   : > { %p2545_p0 = scmp.ne.s32.totalorder %s2968_s17, %s2544_s14  ;;  %p2552_p7 = scmp.lt.s32.totalorder %s2968_s17, %s2968_s17 }
  0x45   : > { %p2553_p9 = scmp.lt.s32.totalorder %s2551_s21, %s2544_s14 }
  0x46   : > { %p2547_p2 = pnand %p2545_p0, %p2980_p8 }
  0x47   : > { %p2554_p5 = por %p2553_p9, %p2552_p7 }
  0x48   : > { %p2548_p4 = pneg %p2547_p2 }
  0x4a   : > { %p2555_p10 = pnand %p2554_p5, %p2548_p4 }
  0x4c   : > { %2558 = shalt.err (!%p2555_p10)
}
  0x4d   : > { %2326 = dma.hbm_to_vmem [thread:$0]  (!%p2964_p6), %s3648_s3, 16, %s2968_s17, [#allocation13]  }
  0x4e   : > { %s3649_s5 = sld [smem:[#allocation32_spill]] }
  0x54   : > { %s2559_s24 = scalar_lea.hbm %s3649_s5, 16 }
  0x55   : > { %p2560_p11 = scmp.ne.s32.totalorder %s3649_s5, %s2559_s24  ;;  %p2566_p0 = scmp.lt.u32.totalorder %s2559_s24, %s3649_s5 }
  0x57   : > { %p2562_p12 = pnand %p2560_p11, %p2980_p8 }
  0x59   : > { %p2563_p13 = pneg %p2562_p12 }
  0x5b   : > { %p2568_p2 = pnand %p2566_p0, %p2563_p13 }
  0x5d   : > { %2571 = shalt.err (!%p2568_p2)
}
  0x5e   : > { %s2572_s21 = scalar_lea.vmem %s315_s19, 16  ;;  %s2579_s17 = scalar_lea.vmem %s315_s19, 32 }
  0x5f   : > { %p2573_p4 = scmp.ne.s32.totalorder %s315_s19, %s2572_s21  ;;  %p2580_p5 = scmp.lt.s32.totalorder %s315_s19, %s315_s19 }
  0x60   : > { %p2581_p10 = scmp.lt.s32.totalorder %s2579_s17, %s2572_s21 }
  0x61   : > { %p2575_p7 = pnand %p2573_p4, %p2980_p8 }
  0x62   : > { %p2582_p1 = por %p2581_p10, %p2580_p5 }
  0x63   : > { %p2576_p9 = pneg %p2575_p7 }
  0x65   : > { %p2583_p3 = pnand %p2582_p1, %p2576_p9 }
  0x67   : > { %2586 = shalt.err (!%p2583_p3)
}
  0x68   : > { %2332 = dma.hbm_to_vmem [thread:$0]  (!%p2964_p6), %s3649_s5, 16, %s315_s19, [#allocation16]  }
  0x69   : > { %s2840_s22 = smov [#allocation14]   ;;  %s2841_s24 = smov [#allocation17]  }
  0x6a   : > { %s300_s23 = sshll.u32 %s2840_s22, 4  ;;  %s324_s26 = sshll.u32 %s2841_s24, 4  ;;  %s301_s23 = int_to_ptr.vmem [resolvable:$true] %s300_s23  ;;  %s325_s26 = int_to_ptr.vmem [resolvable:$true] %s324_s26 }
  0x6b   : > { %s3650_s4 = sld [smem:[#allocation31_spill]] }
  0x71   : > { %s2587_s14 = scalar_lea.hbm %s3650_s4, 256 }
  0x72   : > { %p2588_p1 = scmp.ne.s32.totalorder %s3650_s4, %s2587_s14  ;;  %p2594_p12 = scmp.lt.u32.totalorder %s2587_s14, %s3650_s4 }
  0x74   : > { %p2590_p3 = pnand %p2588_p1, %p2980_p8 }
  0x76   : > { %p2591_p11 = pneg %p2590_p3 }
  0x78   : > { %p2596_p13 = pnand %p2594_p12, %p2591_p11 }
  0x7a   : > { %2599 = shalt.err (!%p2596_p13)
}
  0x7b   : > { %s2600_s19 = scalar_lea.vmem %s301_s23, 256  ;;  %p2608_p7 = scmp.lt.s32.totalorder %s301_s23, %s301_s23 }
  0x7c   : > { %p2601_p0 = scmp.ne.s32.totalorder %s301_s23, %s2600_s19  ;;  %p2609_p9 = scmp.lt.s32.totalorder %s2600_s19, %s2600_s19 }
  0x7e   : > { %p2603_p2 = pnand %p2601_p0, %p2980_p8  ;;  %p2610_p5 = por %p2609_p9, %p2608_p7 }
  0x80   : > { %p2604_p4 = pneg %p2603_p2 }
  0x82   : > { %p2611_p10 = pnand %p2610_p5, %p2604_p4 }
  0x84   : > { %2614 = shalt.err (!%p2611_p10)
}
  0x85   : > { %s3651_s30 = smov 64   ;;  %s3652_s6 = sld [smem:[#allocation33_spill]] }
  0x86   : > { %2329 = dma.hbm_to_vmem [thread:$0]  (!%p2964_p6), %s3650_s4, 256, %s301_s23, [#allocation13], %s3651_s30, %s3651_s30, %s2839_s20  }
  0x8b   : > { %s2615_s16 = scalar_lea.hbm %s3652_s6, 256 }
  0x8c   : > { %p2616_p1 = scmp.ne.s32.totalorder %s3652_s6, %s2615_s16  ;;  %p2622_p12 = scmp.lt.u32.totalorder %s2615_s16, %s3652_s6 }
  0x8e   : > { %p2618_p3 = pnand %p2616_p1, %p2980_p8 }
  0x90   : > { %p2619_p11 = pneg %p2618_p3 }
  0x92   : > { %p2624_p13 = pnand %p2622_p12, %p2619_p11 }
  0x94   : > { %2627 = shalt.err (!%p2624_p13)
}
  0x95   : > { %s2628_s19 = scalar_lea.vmem %s325_s26, 256  ;;  %p2636_p7 = scmp.lt.s32.totalorder %s325_s26, %s325_s26 }
  0x96   : > { %p2629_p0 = scmp.ne.s32.totalorder %s325_s26, %s2628_s19  ;;  %p2637_p9 = scmp.lt.s32.totalorder %s2628_s19, %s2628_s19 }
  0x98   : > { %p2631_p2 = pnand %p2629_p0, %p2980_p8  ;;  %p2638_p5 = por %p2637_p9, %p2636_p7 }
  0x9a   : > { %p2632_p4 = pneg %p2631_p2 }
  0x9c   : > { %p2639_p10 = pnand %p2638_p5, %p2632_p4 }
  0x9e   : > { %2642 = shalt.err (!%p2639_p10)
}
  0x9f   : > { %2335 = dma.hbm_to_vmem [thread:$0]  (!%p2964_p6), %s3652_s6, 256, %s325_s26, [#allocation16], %s3651_s30, %s3651_s30, %s2839_s20  }
  0xa0   : > { %s2842_s22 = smov [#allocation18]   ;;  %s2643_s14 = scalar_lea.hbm %s3628_s7, 16 }
  0xa1   : > { %s338_s24 = sshll.u32 %s2842_s22, 4  ;;  %p2644_p1 = scmp.ne.s32.totalorder %s3628_s7, %s2643_s14  ;;  %s339_s24 = int_to_ptr.vmem [resolvable:$true] %s338_s24 }
  0xa2   : > { %p2650_p12 = scmp.lt.u32.totalorder %s2643_s14, %s3628_s7 }
  0xa3   : > { %p2646_p3 = pnand %p2644_p1, %p2980_p8 }
  0xa5   : > { %p2647_p11 = pneg %p2646_p3 }
  0xa7   : > { %p2652_p13 = pnand %p2650_p12, %p2647_p11 }
  0xa9   : > { %2655 = shalt.err (!%p2652_p13)
}
  0xaa   : > { %s2656_s20 = scalar_lea.vmem %s339_s24, 16  ;;  %s2663_s26 = scalar_lea.vmem %s339_s24, 32 }
  0xab   : > { %p2657_p0 = scmp.ne.s32.totalorder %s339_s24, %s2656_s20  ;;  %p2664_p7 = scmp.lt.s32.totalorder %s339_s24, %s339_s24 }
  0xac   : > { %p2665_p9 = scmp.lt.s32.totalorder %s2663_s26, %s2656_s20 }
  0xad   : > { %p2659_p2 = pnand %p2657_p0, %p2980_p8 }
  0xae   : > { %p2666_p5 = por %p2665_p9, %p2664_p7 }
  0xaf   : > { %p2660_p4 = pneg %p2659_p2 }
  0xb1   : > { %p2667_p10 = pnand %p2666_p5, %p2660_p4 }
  0xb3   : > { %2670 = shalt.err (!%p2667_p10)
}
  0xb4   : > { %2338 = dma.hbm_to_vmem [thread:$0]  (!%p2964_p6), %s3628_s7, 16, %s339_s24, [#allocation19]  }
  0xb5   : > { %s2073_s25 = sadd.s32 4294967294, %s2833_s10   ;;  %s49_s18 = sadd.s32 1, %s2829_s9 }
  0xb6   : > { %p51_p8 = scmp.ge.s32.totalorder %s49_s18, 2  ;;  %s58_s15 = sadd.s32 1, %s2821_s29 }
  0xb7   : > { %p65_p1 = scmp.ne.s32.totalorder %s2821_s29, %s2817_s28  ;;  %p66_p3 = scmp.eq.s32.totalorder %s2833_s10, 0 }
  0xb8   : > { %s3680_s18 = smov (%p51_p8, %s49_s18), 0  ;;  %p71_p12 = scmp.ne.s32.totalorder %s2817_s28, %s2813_s27 }
  0xb9   : > { %p3115_p11 = por %p66_p3, %p65_p1  ;;  %s53_s24 = ssub.s32 %s2829_s9, %s3680_s18 }
  0xba   : > { %p251_p6 = scmp.eq.s32.totalorder %s2948_s11, 1  ;;  %p56_p13 = scmp.eq.s32.totalorder %s53_s24, 0 }
  0xbb   : > { %p3654_p0 = scmp.eq.s32.totalorder %s2948_s11, 0  ;;  %p257_p7 = scmp.eq.s32.totalorder %s2073_s25, 1 }
  0xbc   : > { %p3130_p4 = por %p251_p6, %p65_p1  ;;  %p2356_p5 = scmp.lt.s32.totalorder %s2833_s10, 2 }
  0xbd   : > { %p3126_p2 = por %p3654_p0, %p71_p12  ;;  %p3137_p9 = por %p257_p7, %p71_p12 }
  0xbe   : > { %s3656_s16 = scalar_select %p3130_p4, 1, 0 }
  0xbf   : > { %s3655_s13 = scalar_select %p3126_p2, 1, 0 }
  0xc0   : > { %s3135_s14 = scalar_select %p56_p13, %s2821_s29, %s58_s15  }
  0xc1   : > { %s3657_s21 = scalar_select %p3137_p9, 1, 0 }
  0xc2   : > { %s349_s17 = sand.u32 1, %s2821_s29   ;;  %s2083_s8 = sshll.u32 %s2829_s9, 7 }
  0xc3   : > { %s3144_s19 = sshll.u32 %s349_s17, 3  ;;  %s3149_s30 = scalar_lea.hbm %s3621_s0, %s2083_s8 }
  0xc4   : > { %s353_s23 = scalar_lea.vmem [#allocation6], %s3144_s19  ;;  %p3154_p10 = pnand %p2356_p5, %p3115_p11 }
  0xc5   : > { %s361_s25 = sshll.u32 %s353_s23, 4  ;;  %s3163_s26 = scalar_lea.hbm %s3622_s1, %s2083_s8  ;;  %s3158_s25 = int_to_ptr.vmem [resolvable:$true] %s361_s25 }
  0xc6   : > { %s350_s2 = scalar_lea.sflag [#allocation7], %s349_s17  ;;  %s2671_s3 = scalar_lea.hbm %s3149_s30, 128 }
  0xc7   : > { %p2672_p8 = scmp.ne.s32.totalorder %s3149_s30, %s2671_s3  ;;  %p2673_p1 = pneg %p3154_p10 }
  0xc8   : > { %s2676_s4 = scalar_lea.hbm %s3621_s0, 256  ;;  %p2677_p12 = scmp.lt.u32.totalorder %s3149_s30, %s3621_s0 }
  0xc9   : > { %p2674_p3 = pnand %p2673_p1, %p2672_p8  ;;  %p2678_p6 = scmp.lt.u32.totalorder %s2676_s4, %s2671_s3 }
  0xca   : > { %p2680_p0 = scmp.lt.u32.totalorder %s2671_s3, %s3149_s30 }
  0xcb   : > { %p2675_p11 = pneg %p2674_p3  ;;  %p2679_p13 = por %p2678_p6, %p2677_p12 }
  0xcd   : > { %p2681_p7 = por %p2680_p0, %p2679_p13 }
  0xcf   : > { %p2682_p5 = pnand %p2681_p7, %p2675_p11 }
  0xd1   : > { %2685 = shalt.err (!%p2682_p5)
}
  0xd2   : > { %s2686_s17 = scalar_lea.vmem %s3158_s25, 128  ;;  %s2843_s8 = smov [#allocation6]  }
  0xd3   : > { %p2687_p8 = scmp.ne.s32.totalorder %s3158_s25, %s2686_s17  ;;  %s2691_s24 = sshll.u32 %s2843_s8, 4  ;;  %s2692_s24 = int_to_ptr.vmem [resolvable:$false] %s2691_s24 }
  0xd4   : > { %s2693_s5 = scalar_lea.vmem %s2692_s24, 256  ;;  %p2694_p4 = scmp.lt.s32.totalorder %s3158_s25, %s2692_s24 }
  0xd5   : > { %p2689_p3 = pnand %p2687_p8, %p2673_p1  ;;  %p2695_p12 = scmp.lt.s32.totalorder %s2693_s5, %s2686_s17 }
  0xd7   : > { %p2690_p9 = pneg %p2689_p3  ;;  %p2696_p6 = por %p2695_p12, %p2694_p4 }
  0xd9   : > { %p2697_p13 = pnand %p2696_p6, %p2690_p9 }
  0xdb   : > { %2700 = shalt.err (!%p2697_p13)
}
  0xdc   : > { %2342 = dma.hbm_to_vmem [thread:$0]  (!%p3154_p10), %s3149_s30, 128, %s3158_s25, %s350_s2  }
  0xdd   : > { %s368_s3 = sand.u32 1, %s2833_s10   ;;  %s372_s4 = scalar_lea.vmem [#allocation9], %s3144_s19 }
  0xde   : > { %s380_s6 = sshll.u32 %s372_s4, 4  ;;  %s369_s20 = scalar_lea.sflag [#allocation10], %s368_s3  ;;  %s381_s6 = int_to_ptr.vmem [resolvable:$true] %s380_s6 }
  0xdf   : > { %s2701_s22 = scalar_lea.hbm %s3163_s26, 128  ;;  %s2706_s8 = scalar_lea.hbm %s3622_s1, 256 }
  0xe0   : > { %p2702_p4 = scmp.ne.s32.totalorder %s3163_s26, %s2701_s22  ;;  %p2707_p0 = scmp.lt.u32.totalorder %s3163_s26, %s3622_s1 }
  0xe1   : > { %p2708_p7 = scmp.lt.u32.totalorder %s2706_s8, %s2701_s22  ;;  %p2710_p8 = scmp.lt.u32.totalorder %s2701_s22, %s3163_s26 }
  0xe2   : > { %p2704_p9 = pnand %p2702_p4, %p2673_p1 }
  0xe3   : > { %p2709_p5 = por %p2708_p7, %p2707_p0 }
  0xe4   : > { %p2705_p11 = pneg %p2704_p9 }
  0xe5   : > { %p2711_p3 = por %p2710_p8, %p2709_p5 }
  0xe7   : > { %p2712_p12 = pnand %p2711_p3, %p2705_p11 }
  0xe9   : > { %2715 = shalt.err (!%p2712_p12)
}
  0xea   : > { %s2716_s2 = scalar_lea.vmem %s381_s6, 128  ;;  %s2844_s19 = smov [#allocation9]  }
  0xeb   : > { %p2717_p6 = scmp.ne.s32.totalorder %s381_s6, %s2716_s2  ;;  %s2721_s30 = sshll.u32 %s2844_s19, 4  ;;  %s2722_s30 = int_to_ptr.vmem [resolvable:$false] %s2721_s30 }
  0xec   : > { %s2723_s25 = scalar_lea.vmem %s2722_s30, 256  ;;  %p2724_p9 = scmp.lt.s32.totalorder %s381_s6, %s2722_s30 }
  0xed   : > { %p2719_p13 = pnand %p2717_p6, %p2673_p1  ;;  %p2725_p2 = scmp.lt.s32.totalorder %s2723_s25, %s2716_s2 }
  0xef   : > { %p2720_p4 = pneg %p2719_p13  ;;  %p2726_p0 = por %p2725_p2, %p2724_p9 }
  0xf1   : > { %p2727_p7 = pnand %p2726_p0, %p2720_p4 }
  0xf3   : > { %2730 = shalt.err (!%p2727_p7)
}
  0xf4   : > { %2345 = dma.hbm_to_vmem [thread:$0]  (!%p3154_p10), %s3163_s26, 128, %s381_s6, %s369_s20  }
  0xf5   : > { %p3659_p11 = scmp.ne.s32.totalorder %s3644_s12, 0 }
  0xf6   : > { %s3214_s3 = sand.u32 (!%p3659_p11), 1, %s2817_s28   ;;  %p3660_p2 = scmp.ne.s32.totalorder (!%p3659_p11), %s3655_s13, 0 }
  0xf7   : > { %389 = sbr.rel (%p3659_p11) target bundleno = 1937 (0x791), region = 52  ;;  %s3217_s4 = sshll.u32 (!%p3659_p11), %s3214_s3, 3 }
  0xf8   : > { %s392_s22 = scalar_lea.sflag (!%p3659_p11), [#allocation7], %s3214_s3  ;;  %s395_s23 = scalar_lea.vmem (!%p3659_p11), [#allocation6], %s3217_s4 }
  0xfe   : > { %2784 = dma.done.wait (%p3660_p2), %s392_s22, 128  }
  0xff   : > { %2786 = vsyncadd (%p3660_p2), %s392_s22, 4294967168  ;;  %s400_s12 = sand.u32 1, %s2948_s11   ;;  %s404_s26 = scalar_lea.vmem [#allocation9], %s3217_s4 }
 0x100   : > { %s401_s15 = scalar_lea.sflag [#allocation10], %s400_s12 }
 0x101   : > { %2788 = dma.done.wait (%p3660_p2), %s401_s15, 128  }
 0x102   : > { %2790 = vsyncadd (%p3660_p2), %s401_s15, 4294967168  ;;  %p3661_p10 = scmp.eq.s32.totalorder %s2948_s11, 0 }
 0x104   : > { %2792 = dma.done.wait (%p3661_p10), [#allocation10], 256   ;;  %p3662_p1 = pmov %p3661_p10 }
 0x106   : > { %2794 = vsyncadd (%p3662_p1), [#allocation10], 4294967040  ;;  %p3663_p5 = pmov %p3662_p1 }
 0x107   : > { %p3664_p8 = pmov %p3662_p1 }
 0x108   : > { %2796 = dma.done.wait (%p3663_p5), [#allocation13], 272  }
 0x109   : > { %2798 = vsyncadd (%p3664_p8), [#allocation13], 4294967024  ;;  %p3665_p3 = pmov %p3662_p1 }
 0x10a   : > { %p3666_p12 = pmov %p3662_p1 }
 0x10b   : > { %2800 = dma.done.wait (%p3665_p3), [#allocation16], 272  }
 0x10c   : > { %2802 = vsyncadd (%p3666_p12), [#allocation16], 4294967024  ;;  %p3667_p6 = pmov %p3662_p1 }
 0x10d   : > { %p3668_p13 = pmov %p3662_p1 }
 0x10e   : > { %2804 = dma.done.wait (%p3667_p6), [#allocation19], 16  }
 0x10f   : > { %2806 = vsyncadd (%p3668_p13), [#allocation19], 4294967280  ;;  %vm496_vm0 = vcmask 261120   ;;  %v2845_v0 = vmov 0.0   ;;  %vm2846_vm1 = vmmov 0   ;;  %v2448_v1 = vld [vmem:[#allocation11] sm:$0xff]  }
 0x110   : > { %2170 = vmatprep.subr.bf16.mxu0 %v2845_v0  ;;  %2178 = vmatprep.subr.bf16.mxu1 %v2845_v0  ;;  %560 = vst.msk [vmem:[#allocation5] sm:$0xff] %vm496_vm0, %v2845_v0  ;;  %v2449_v2 = vld [vmem:[#allocation14] sm:$0xff]   ;;  %v2450_v3 = vld [vmem:[#allocation11 + $0x8] sm:$0xff]   ;;  %v2451_v4 = vld [vmem:[#allocation14 + $0x8] sm:$0xff]   ;;  %vm541_vm2 = vcmask 257024   ;;  %vm632_vm3 = vcmask 31744  }
 0x111   : > { %2174 = vmatprep.mubr.msk.bf16.mxu0 %vm2846_vm1, %v2845_v0  ;;  %2182 = vmatprep.mubr.msk.bf16.mxu1 %vm2846_vm1, %v2845_v0  ;;  %v471_v5 = vld [vmem:[%s395_s23] sm:$0xff]  ;;  %v561_v6 = vld [vmem:[%s404_s26] sm:$0xff]  ;;  %s2847_s11 = smov 124   ;;  %s2848_s13 = smov 120   ;;  %vm680_vm4 = vcmask 64512   ;;  %vm543_vm5 = vcmask 7168  }
 0x112   : > { %2171 = vmatpush3.bf16.msra.mxu0 %v2448_v1  ;;  %2179 = vmatpush3.bf16.msra.mxu1 %v2449_v2  ;;  %v472_v7 = vpack.c.bf16 %v471_v5, %v471_v5  ;;  %v562_v8 = vpack.c.bf16 %v561_v6, %v561_v6  ;;  %v2096_v9 = vld [vmem:[#allocation12] ss:$0 sm:$0xff]  ;;  %v2100_v10 = vld [vmem:[#allocation15] ss:$0 sm:$0xff]  ;;  %s2849_s6 = smov 116   ;;  %s2850_s20 = smov 112  }
 0x113   : > { %2172 = vmatprep.subr.bf16.mxu0 %v2845_v0  ;;  %2180 = vmatprep.subr.bf16.mxu1 %v2845_v0  ;;  %s2851_s17 = smov 108   ;;  %s2852_s8 = smov 104   ;;  %v2854_v52 = vmov -inf   ;;  %552 = vst.msk [vmem:[#allocation4] sm:$0xff] %vm543_vm5, %v2845_v0  ;;  %553 = vst.msk [vmem:[#allocation4 + $0x8] sm:$0xff] %vm543_vm5, %v2845_v0  ;;  %v2855_v53 = vmov 0  }
 0x114   : > { %s2853_s24 = smov 100   ;;  %544 = vst.msk [vmem:[#allocation3] sm:$0xff] %vm543_vm5, %v2854_v52  ;;  %545 = vst.msk [vmem:[#allocation3 + $0x8] sm:$0xff] %vm543_vm5, %v2854_v52  ;;  %2446 = vset.pattern.permute.xlu0 %v2855_v53  ;;  %2447 = vset.pattern.permute.xlu1 %v2855_v53  ;;  %s2856_s5 = smov 84   ;;  %vm719_vm6 = vcmask 1043456   ;;  %vm905_vm7 = vcmask 64544  }
 0x115   : > { %546 = vst.msk [vmem:[#allocation3 + $0x10] sm:$0xff] %vm543_vm5, %v2854_v52  ;;  %547 = vst.msk [vmem:[#allocation3 + $0x18] sm:$0xff] %vm543_vm5, %v2854_v52  ;;  %s2857_s2 = smov 80   ;;  %s2858_s19 = smov 76   ;;  %vm1044_vm8 = vcmask 97344   ;;  %vm1183_vm9 = vcmask 130144  }
 0x116   : > { %2173 = vmatpush3.bf16.msra.mxu0 %v2450_v3  ;;  %2181 = vmatpush3.bf16.msra.mxu1 %v2451_v4  ;;  %548 = vst.msk [vmem:[#allocation3 + $0x20] sm:$0xff] %vm543_vm5, %v2854_v52  ;;  %549 = vst.msk [vmem:[#allocation3 + $0x28] sm:$0xff] %vm543_vm5, %v2854_v52  ;;  %s2859_s30 = smov 72   ;;  %s2860_s25 = smov 96   ;;  %vm1322_vm10 = vcmask 162944   ;;  %vm1461_vm11 = vcmask 195744  }
 0x117   : > { %2186 = vmatprep.subr.bf16.mxu0 %v2845_v0  ;;  %2192 = vmatprep.subr.bf16.mxu1 %v2845_v0  ;;  %550 = vst.msk [vmem:[#allocation3 + $0x30] sm:$0xff] %vm543_vm5, %v2854_v52  ;;  %551 = vst.msk [vmem:[#allocation3 + $0x38] sm:$0xff] %vm543_vm5, %v2854_v52  ;;  %s2861_s22 = smov 92   ;;  %s2862_s23 = smov 88   ;;  %vm1600_vm12 = vcmask 228544   ;;  %vm1739_vm13 = vcmask 261344  }
 0x118   : > { %554 = vst.msk [vmem:[#allocation4 + $0x10] sm:$0xff] %vm543_vm5, %v2845_v0  ;;  %555 = vst.msk [vmem:[#allocation4 + $0x18] sm:$0xff] %vm543_vm5, %v2845_v0  ;;  %s2863_s12 = smov 68   ;;  %s2864_s15 = smov 4  }
 0x119   : > { %2175 = vmatmul.mubr.msk.bf16.vlgmr.msra.gmra.mrb[0].mxu0 %vm496_vm0, %v472_v7  ;;  %2183 = vmatmul.mubr.msk.bf16.vlgmr.msra.gmra.mrb[0].mxu1 %vm496_vm0, %v562_v8  ;;  %556 = vst.msk [vmem:[#allocation4 + $0x20] sm:$0xff] %vm543_vm5, %v2845_v0  ;;  %557 = vst.msk [vmem:[#allocation4 + $0x28] sm:$0xff] %vm543_vm5, %v2845_v0  ;;  %s2865_s26 = smov 8   ;;  %p3671_p9 = scmp.ne.s32.totalorder %s3656_s16, 0 }
 0x11a   : > { %2188 = vmatprep.mubr.msk.bf16.mxu0 %vm2846_vm1, %v2845_v0  ;;  %2194 = vmatprep.mubr.msk.bf16.mxu1 %vm2846_vm1, %v2845_v0  ;;  %558 = vst.msk [vmem:[#allocation4 + $0x30] sm:$0xff] %vm543_vm5, %v2845_v0  ;;  %559 = vst.msk [vmem:[#allocation4 + $0x38] sm:$0xff] %vm543_vm5, %v2845_v0 }
 0x11b   : > { %v3359_v8 = vld [vmem:[#allocation3] sm:$0xff] }
 0x1ec   : > { %v534_v11 = vpop.f32.mrb[0].mxu0  ;;  %v624_v13 = vpop.f32.mrb[0].mxu1 }
 0x1ed   : > { %v535_v12 = vadd.f32 %v2096_v9, %v534_v11  ;;  %v2176_v14 = vpop.f32.mrb[1].mxu0  ;;  %v625_v15 = vadd.f32 %v2100_v10, %v624_v13  ;;  %v2184_v16 = vpop.f32.mrb[1].mxu1 }
 0x1ee   : > { %v537_v17 = vpop.f32.mrb[2].mxu0  ;;  %v627_v19 = vpop.f32.mrb[2].mxu1 }
 0x1ef   : > { %v540_v18 = vpack.c.bf16 %v535_v12, %v535_v12  ;;  %v2177_v20 = vpop.f32.mrb[3].mxu0  ;;  %v3267_v21 = vpack.c.bf16 %v625_v15, %v625_v15  ;;  %v2185_v22 = vpop.f32.mrb[3].mxu1 }
 0x1f1   : > { %542 = vst.msk [vmem:[#allocation2] sm:$0xf] %vm541_vm2, %v540_v18  ;;  %770 = vrot.lane.b32.xlu0 %v3267_v21, %s2847_s11  ;;  %v637_v23 = vsel %vm632_vm3, %v3267_v21, 0  ;;  %909 = vrot.lane.b32.xlu1 %v3267_v21, %s2848_s13 }
 0x1f2   : > { %2187 = vmatpush3.bf16.xpose.msra.mxu0 %v637_v23 }
 0x1f3   : > { %2198 = vmatprep.subr.bf16.mxu0 %v2845_v0 }
 0x1f8   : > { %v631_v24 = vld [vmem:[#allocation2] sm:$0xf] }
 0x1f9   : > { %v2106_v25 = vcombine.low %v631_v24, %v631_v24  ;;  %2189 = vmatmul.mubr.msk.bf16.vlgmr.msra.gmra.mrb[4].mxu0 %vm632_vm3, %v631_v24 }
 0x1fa   : > { %2200 = vmatprep.mubr.msk.bf16.mxu0 %vm2846_vm1, %v2845_v0 }
 0x1fb   : > { %907 = vrot.lane.b32.xlu1 %v2106_v25, %s2848_s13  ;;  %768 = vrot.lane.b32.xlu0 %v2106_v25, %s2847_s11  ;;  %s2866_s11 = smov 12   ;;  %s2867_s13 = smov 16  }
 0x1ff   : > { %1046 = vrot.lane.b32.xlu1 %v2106_v25, %s2849_s6  ;;  %1048 = vrot.lane.b32.xlu0 %v3267_v21, %s2849_s6  ;;  %s2868_s6 = smov 20  }
 0x203   : > { %1185 = vrot.lane.b32.xlu1 %v2106_v25, %s2850_s20  ;;  %1187 = vrot.lane.b32.xlu0 %v3267_v21, %s2850_s20  ;;  %s2869_s20 = smov 24  }
 0x207   : > { %1324 = vrot.lane.b32.xlu1 %v2106_v25, %s2851_s17  ;;  %1326 = vrot.lane.b32.xlu0 %v3267_v21, %s2851_s17  ;;  %s2870_s17 = smov 28  }
 0x20b   : > { %1463 = vrot.lane.b32.xlu1 %v2106_v25, %s2852_s8  ;;  %1465 = vrot.lane.b32.xlu0 %v3267_v21, %s2852_s8  ;;  %s3669_s8 = sld [smem:[#allocation28_spill]] }
 0x20f   : > { %1602 = vrot.lane.b32.xlu1 %v2106_v25, %s2853_s24  ;;  %1604 = vrot.lane.b32.xlu0 %v3267_v21, %s2853_s24 }
 0x211   : > { %s2126_s24 = sshll.u32 %s3669_s8, 7 }
 0x263   : > { %v771_v26 = vpop.permute.xlu0 %770  ;;  %v910_v28 = vpop.permute.xlu1 %909 }
 0x264   : > { %v776_v27 = vsel %vm632_vm3, %v771_v26, 0  ;;  %v915_v30 = vsel %vm632_vm3, %v910_v28, 0 }
 0x265   : > { %2199 = vmatpush3.bf16.xpose.msra.mxu0 %v776_v27 }
 0x266   : > { %2210 = vmatprep.subr.bf16.mxu0 %v2845_v0 }
 0x26d   : > { %v769_v29 = vpop.permute.xlu0 %768  ;;  %v908_v32 = vpop.permute.xlu1 %907 }
 0x26e   : > { %2201 = vmatmul.mubr.msk.bf16.vlgmr.msra.gmra.mrb[8].mxu0 %vm632_vm3, %v769_v29 }
 0x26f   : > { %2211 = vmatpush3.bf16.xpose.msra.mxu0 %v915_v30  ;;  %2212 = vmatprep.mubr.msk.bf16.mxu0 %vm2846_vm1, %v2845_v0 }
 0x270   : > { %2222 = vmatprep.subr.bf16.mxu0 %v2845_v0 }
 0x271   : > { %v1049_v31 = vpop.permute.xlu0 %1048  ;;  %v1047_v35 = vpop.permute.xlu1 %1046 }
 0x272   : > { %v1054_v33 = vsel %vm632_vm3, %v1049_v31, 0  ;;  %v3387_v31 = vld [vmem:[#allocation3 + $0x8] sm:$0xff] }
 0x275   : > { %v1188_v34 = vpop.permute.xlu0 %1187  ;;  %v1186_v38 = vpop.permute.xlu1 %1185 }
 0x276   : > { %2213 = vmatmul.mubr.msk.bf16.vlgmr.msra.gmra.mrb[12].mxu0 %vm632_vm3, %v908_v32  ;;  %v1193_v36 = vsel %vm632_vm3, %v1188_v34, 0  ;;  %v958_v34 = vld [vmem:[#allocation3 + $0x10] sm:$0xff] }
 0x277   : > { %2223 = vmatpush3.bf16.xpose.msra.mxu0 %v1054_v33  ;;  %2224 = vmatprep.mubr.msk.bf16.mxu0 %vm2846_vm1, %v2845_v0 }
 0x278   : > { %2234 = vmatprep.subr.bf16.mxu0 %v2845_v0 }
 0x279   : > { %v1327_v37 = vpop.permute.xlu0 %1326  ;;  %v1325_v41 = vpop.permute.xlu1 %1324 }
 0x27a   : > { %v1332_v39 = vsel %vm632_vm3, %v1327_v37, 0  ;;  %v1097_v37 = vld [vmem:[#allocation3 + $0x18] sm:$0xff] }
 0x27d   : > { %v1466_v40 = vpop.permute.xlu0 %1465  ;;  %v1464_v44 = vpop.permute.xlu1 %1463 }
 0x27e   : > { %2225 = vmatmul.mubr.msk.bf16.vlgmr.msra.gmra.mrb[16].mxu0 %vm632_vm3, %v1047_v35  ;;  %v1471_v42 = vsel %vm632_vm3, %v1466_v40, 0  ;;  %v1236_v40 = vld [vmem:[#allocation3 + $0x20] sm:$0xff] }
 0x27f   : > { %2235 = vmatpush3.bf16.xpose.msra.mxu0 %v1193_v36  ;;  %2236 = vmatprep.mubr.msk.bf16.mxu0 %vm2846_vm1, %v2845_v0 }
 0x280   : > { %2246 = vmatprep.subr.bf16.mxu0 %v2845_v0 }
 0x281   : > { %v1605_v43 = vpop.permute.xlu0 %1604  ;;  %v1603_v46 = vpop.permute.xlu1 %1602 }
 0x282   : > { %v1610_v45 = vsel %vm632_vm3, %v1605_v43, 0  ;;  %v1375_v43 = vld [vmem:[#allocation3 + $0x28] sm:$0xff] }
 0x286   : > { %2237 = vmatmul.mubr.msk.bf16.vlgmr.msra.gmra.mrb[20].mxu0 %vm632_vm3, %v1186_v38 }
 0x287   : > { %2247 = vmatpush3.bf16.xpose.msra.mxu0 %v1332_v39  ;;  %2248 = vmatprep.mubr.msk.bf16.mxu0 %vm2846_vm1, %v2845_v0 }
 0x288   : > { %2258 = vmatprep.subr.bf16.mxu0 %v2845_v0 }
 0x28e   : > { %2249 = vmatmul.mubr.msk.bf16.vlgmr.msra.gmra.mrb[24].mxu0 %vm632_vm3, %v1325_v41 }
 0x28f   : > { %2259 = vmatpush3.bf16.xpose.msra.mxu0 %v1471_v42  ;;  %2260 = vmatprep.mubr.msk.bf16.mxu0 %vm2846_vm1, %v2845_v0 }
 0x290   : > { %2270 = vmatprep.subr.bf16.mxu0 %v2845_v0 }
 0x296   : > { %2261 = vmatmul.mubr.msk.bf16.vlgmr.msra.gmra.mrb[28].mxu0 %vm632_vm3, %v1464_v44 }
 0x297   : > { %2271 = vmatpush3.bf16.xpose.msra.mxu0 %v1610_v45  ;;  %2272 = vmatprep.mubr.msk.bf16.mxu0 %vm2846_vm1, %v2845_v0 }
 0x298   : > { %2282 = vmatprep.subr.bf16.mxu0 %v2845_v0 }
 0x29e   : > { %2273 = vmatmul.mubr.msk.bf16.vlgmr.msra.gmra.mrb[32].mxu0 %vm632_vm3, %v1603_v46  ;;  %v3402_v46 = vld [vmem:[#allocation3 + $0x30] sm:$0xff] }
 0x29f   : > { %2286 = vmatprep.mubr.msk.bf16.mxu0 %vm2846_vm1, %v2845_v0 }
 0x2cc   : > { %v3317_v47 = vpop.f32.mrb[4].mxu0 }
 0x2cd   : > { %v2190_v48 = vpop.f32.mrb[5].mxu0  ;;  %v681_v49 = vsel %vm680_vm4, %v3317_v47, -inf }
 0x2ce   : > { %682 = vmax.xlane.f32.xlu0 %v681_v49  ;;  %v676_v50 = vpop.f32.mrb[6].mxu0 }
 0x2cf   : > { %v2191_v51 = vpop.f32.mrb[7].mxu0 }
 0x341   : > { %v3345_v54 = vpop.f32.mrb[8].mxu0 }
 0x342   : > { %v2202_v55 = vpop.f32.mrb[9].mxu0  ;;  %v820_v56 = vsel %vm680_vm4, %v3345_v54, -inf }
 0x343   : > { %821 = vmax.xlane.f32.xlu1 %v820_v56  ;;  %v815_v57 = vpop.f32.mrb[10].mxu0 }
 0x344   : > { %v2203_v58 = vpop.f32.mrb[11].mxu0  ;;  %v3416_v57 = vld [vmem:[#allocation3 + $0x38] sm:$0xff] }
 0x349   : > { %v3349_v59 = vpop.f32.mrb[12].mxu0 }
 0x34a   : > { %v2214_v60 = vpop.f32.mrb[13].mxu0  ;;  %v959_v61 = vsel %vm680_vm4, %v3349_v59, -inf }
 0x34b   : > { %960 = vmax.xlane.f32.xlu0 %v959_v61  ;;  %v954_v62 = vpop.f32.mrb[14].mxu0 }
 0x34c   : > { %v2215_v63 = vpop.f32.mrb[15].mxu0 }
 0x351   : > { %v3353_v1 = vpop.f32.mrb[16].mxu0 }
 0x352   : > { %v2226_v2 = vpop.f32.mrb[17].mxu0  ;;  %v1098_v3 = vsel %vm680_vm4, %v3353_v1, -inf }
 0x353   : > { %1099 = vmax.xlane.f32.xlu0 %v1098_v3  ;;  %v1093_v4 = vpop.f32.mrb[18].mxu0 }
 0x354   : > { %v2227_v5 = vpop.f32.mrb[19].mxu0 }
 0x359   : > { %v3357_v6 = vpop.f32.mrb[20].mxu0 }
 0x35a   : > { %v2238_v7 = vpop.f32.mrb[21].mxu0  ;;  %v1237_v9 = vsel %vm680_vm4, %v3357_v6, -inf }
 0x35b   : > { %1238 = vmax.xlane.f32.xlu1 %v1237_v9  ;;  %v1232_v10 = vpop.f32.mrb[22].mxu0  ;;  %v683_v11 = vpop.xlane.xlu0 %682 }
 0x35c   : > { %v2239_v12 = vpop.f32.mrb[23].mxu0  ;;  %v3364_v13 = vmax.f32 %v3359_v8, %v683_v11 }
 0x35e   : > { %v685_v14 = vsub.f32 %v3359_v8, %v3364_v13  ;;  %704 = vst.msk [vmem:[#allocation3] sm:$0xff] %vm543_vm5, %v3364_v13 }
 0x360   : > { %v686_v55 = vmul.f32 1.442695, %v685_v14 }
 0x361   : > { %v3370_v15 = vpop.f32.mrb[24].mxu0 }
 0x362   : > { %v2250_v16 = vpop.f32.mrb[25].mxu0  ;;  %v1376_v17 = vsel %vm680_vm4, %v3370_v15, -inf }
 0x363   : > { %1377 = vmax.xlane.f32.xlu0 %v1376_v17  ;;  %v1371_v18 = vpop.f32.mrb[26].mxu0 }
 0x364   : > { %v2251_v19 = vpop.f32.mrb[27].mxu0 }
 0x369   : > { %v3374_v20 = vpop.f32.mrb[28].mxu0 }
 0x36a   : > { %v2262_v22 = vpop.f32.mrb[29].mxu0  ;;  %v1515_v23 = vsel %vm680_vm4, %v3374_v20, -inf }
 0x36b   : > { %1516 = vmax.xlane.f32.xlu1 %v1515_v23  ;;  %v1510_v24 = vpop.f32.mrb[30].mxu0 }
 0x36c   : > { %v2263_v25 = vpop.f32.mrb[31].mxu0 }
 0x371   : > { %v3378_v26 = vpop.f32.mrb[32].mxu0 }
 0x372   : > { %v2274_v27 = vpop.f32.mrb[33].mxu0  ;;  %v1654_v28 = vsel %vm680_vm4, %v3378_v26, -inf }
 0x373   : > { %1655 = vmax.xlane.f32.xlu1 %v1654_v28  ;;  %v1649_v29 = vpop.f32.mrb[34].mxu0 }
 0x374   : > { %v2275_v30 = vpop.f32.mrb[35].mxu0 }
 0x379   : > { %690 = vperm.xlu0 %2446, %v3364_v13  }
 0x37d   : > { %1130 = vrot.lane.b32.xlu0 %v3267_v21, %s2856_s5  ;;  %s465_s5 = scalar_lea.vmem [#allocation20], %s3217_s4 }
 0x381   : > { %1269 = vrot.lane.b32.xlu0 %v3267_v21, %s2857_s2  ;;  %s1908_s2 = sshll.u32 %s465_s5, 4  ;;  %s3573_s2 = int_to_ptr.vmem [resolvable:$true] %s1908_s2 }
 0x382   : > { %s2731_s4 = scalar_lea.vmem %s3573_s2, 128 }
 0x383   : > { %p2732_p4 = scmp.ne.s32.totalorder %s3573_s2, %s2731_s4 }
 0x385   : > { %1408 = vrot.lane.b32.xlu0 %v3267_v21, %s2858_s19  ;;  %p2733_p0 = pnand %p2732_p4, %p3671_p9 }
 0x387   : > { %p2734_p7 = pneg %p2733_p0 }
 0x389   : > { %1547 = vrot.lane.b32.xlu0 %v3267_v21, %s2859_s30 }
 0x3d0   : > { %v822_v32 = vpop.xlane.xlu1 %821 }
 0x3d1   : > { %v3390_v33 = vmax.f32 %v3387_v31, %v822_v32 }
 0x3d3   : > { %843 = vst.msk [vmem:[#allocation3 + $0x8] sm:$0xff] %vm543_vm5, %v3390_v33  ;;  %829 = vperm.xlu1 %2447, %v3390_v33   ;;  %v824_v8 = vsub.f32 %v3387_v31, %v3390_v33 }
 0x3d5   : > { %v825_v10 = vmul.f32 1.442695, %v824_v8 }
 0x3d7   : > { %714 = vrot.lane.b32.xlu1 %v3267_v21, %s2860_s25  ;;  %s3670_s25 = sld [smem:[#allocation34_spill]] }
 0x3d8   : > { %v961_v35 = vpop.xlane.xlu0 %960 }
 0x3d9   : > { %v962_v36 = vmax.f32 %v958_v34, %v961_v35 }
 0x3db   : > { %982 = vst.msk [vmem:[#allocation3 + $0x10] sm:$0xff] %vm543_vm5, %v962_v36  ;;  %968 = vperm.xlu1 %2447, %v962_v36   ;;  %v963_v56 = vsub.f32 %v958_v34, %v962_v36 }
 0x3df   : > { %852 = vrot.lane.b32.xlu1 %v3267_v21, %s2861_s22  ;;  %s3571_s22 = scalar_lea.hbm %s3670_s25, %s2126_s24 }
 0x3e0   : > { %v1100_v38 = vpop.xlane.xlu0 %1099 }
 0x3e1   : > { %v1101_v39 = vmax.f32 %v1097_v37, %v1100_v38 }
 0x3e3   : > { %1121 = vst.msk [vmem:[#allocation3 + $0x18] sm:$0xff] %vm543_vm5, %v1101_v39  ;;  %1107 = vperm.xlu1 %2447, %v1101_v39   ;;  %v1102_v11 = vsub.f32 %v1097_v37, %v1101_v39 }
 0x3e5   : > { %v1103_v12 = vmul.f32 1.442695, %v1102_v11 }
 0x3e7   : > { %991 = vrot.lane.b32.xlu1 %v3267_v21, %s2862_s23  ;;  %s1894_s23 = scalar_lea.sflag [#allocation8], %s3214_s3 }
 0x3e8   : > { %v1239_v41 = vpop.xlane.xlu1 %1238 }
 0x3e9   : > { %v1240_v42 = vmax.f32 %v1236_v40, %v1239_v41 }
 0x3eb   : > { %1260 = vst.msk [vmem:[#allocation3 + $0x20] sm:$0xff] %vm543_vm5, %v1240_v42  ;;  %1246 = vperm.xlu1 %2447, %v1240_v42   ;;  %v1241_v58 = vsub.f32 %v1236_v40, %v1240_v42 }
 0x3ed   : > { %v1242_v63 = vmul.f32 1.442695, %v1241_v58 }
 0x3f0   : > { %v1378_v44 = vpop.xlane.xlu0 %1377 }
 0x3f1   : > { %v1379_v45 = vmax.f32 %v1375_v43, %v1378_v44 }
 0x3f3   : > { %1399 = vst.msk [vmem:[#allocation3 + $0x28] sm:$0xff] %vm543_vm5, %v1379_v45  ;;  %1385 = vperm.xlu1 %2447, %v1379_v45   ;;  %v1380_v2 = vsub.f32 %v1375_v43, %v1379_v45 }
 0x3f5   : > { %v1381_v4 = vmul.f32 1.442695, %v1380_v2 }
 0x3f8   : > { %v691_v48 = vpop.permute.xlu0 %690  ;;  %v1517_v49 = vpop.xlane.xlu1 %1516 }
 0x3f9   : > { %v693_v50 = vsub.f32 %v3317_v47, %v691_v48  ;;  %v3406_v51 = vmax.f32 %v3402_v46, %v1517_v49  ;;  %v964_v47 = vmul.f32 1.442695, %v963_v56 }
 0x3fb   : > { %v694_v52 = vmul.f32 1.442695, %v693_v50  ;;  %v1519_v53 = vsub.f32 %v3402_v46, %v3406_v51  ;;  %1538 = vst.msk [vmem:[#allocation3 + $0x30] sm:$0xff] %vm543_vm5, %v3406_v51  ;;  %1524 = vperm.xlu1 %2447, %v3406_v51  }
 0x3fc   : > { %v1131_v38 = vpop.permute.xlu0 %1130 }
 0x3fd   : > { %2455 = vpow2.f32 %v694_v52  ;;  %v1136_v42 = vsel %vm719_vm6, %v1131_v38, 0 }
 0x3fe   : > { %2457 = vpow2.f32 %v686_v55 }
 0x3ff   : > { %2459 = vpow2.f32 %v964_v47 }
 0x400   : > { %v1656_v60 = vpop.xlane.xlu1 %1655  ;;  %2461 = vpow2.f32 %v1242_v63  ;;  %v1270_v45 = vpop.permute.xlu0 %1269 }
 0x401   : > { %v3419_v61 = vmax.f32 %v3416_v57, %v1656_v60  ;;  %2463 = vpow2.f32 %v1381_v4  ;;  %v1275_v52 = vsel %vm719_vm6, %v1270_v45, 0 }
 0x402   : > { %2465 = vpow2.f32 %v825_v10 }
 0x403   : > { %v1658_v62 = vsub.f32 %v3416_v57, %v3419_v61  ;;  %1677 = vst.msk [vmem:[#allocation3 + $0x38] sm:$0xff] %vm543_vm5, %v3419_v61  ;;  %1663 = vperm.xlu1 %2447, %v3419_v61   ;;  %2467 = vpow2.f32 %v1103_v12 }
 0x404   : > { %v1409_v47 = vpop.permute.xlu0 %1408 }
 0x405   : > { %v1414_v2 = vsel %vm719_vm6, %v1409_v47, 0 }
 0x407   : > { %v2456_v3 = vpop.eup %2455  ;;  %1686 = vrot.lane.b32.xlu1 %v3267_v21, %s2863_s12  ;;  %s2871_s12 = smov [#allocation20]  }
 0x408   : > { %v698_v5 = vsel %vm680_vm4, %v2456_v3, 0.0  ;;  %v3428_v7 = vpop.eup %2457  ;;  %v712_v24 = vpack.c.bf16 %v2456_v3, %v2456_v3 }
 0x409   : > { %699 = vadd.xlane.f32.xlu0 %v698_v5  ;;  %v3433_v9 = vpop.eup %2459  ;;  %v1548_v5 = vpop.permute.xlu0 %1547 }
 0x40a   : > { %v3436_v21 = vpop.eup %2461  ;;  %v1553_v12 = vsel %vm719_vm6, %v1548_v5, 0 }
 0x40b   : > { %708 = vperm.xlu1 %2447, %v3428_v7   ;;  %v3439_v13 = vpop.eup %2463 }
 0x40c   : > { %v3442_v14 = vpop.eup %2465 }
 0x40d   : > { %v3445_v16 = vpop.eup %2467 }
 0x40f   : > { %986 = vperm.xlu1 %2447, %v3433_v9  }
 0x413   : > { %1264 = vperm.xlu1 %2447, %v3436_v21  }
 0x417   : > { %1403 = vperm.xlu1 %2447, %v3439_v13  }
 0x41f   : > { %847 = vperm.xlu0 %2446, %v3442_v14  }
 0x423   : > { %1125 = vperm.xlu0 %2446, %v3445_v16  }
 0x452   : > { %v830_v17 = vpop.permute.xlu1 %829 }
 0x453   : > { %v832_v18 = vsub.f32 %v3345_v54, %v830_v17 }
 0x455   : > { %v833_v19 = vmul.f32 1.442695, %v832_v18 }
 0x456   : > { %v715_v22 = vpop.permute.xlu1 %714 }
 0x457   : > { %2469 = vpow2.f32 %v833_v19  ;;  %v721_v23 = vsel %vm719_vm6, %v715_v22, 0 }
 0x458   : > { %2193 = vmatpush3.bf16.msra.mxu1 %v721_v23 }
 0x459   : > { %2204 = vmatprep.subr.bf16.mxu1 %v2845_v0 }
 0x45a   : > { %v969_v25 = vpop.permute.xlu1 %968 }
 0x45b   : > { %v971_v27 = vsub.f32 %v3349_v59, %v969_v25  ;;  %2195 = vmatmul.mubr.msk.bf16.vlgmr.msra.gmra.mrb[4].mxu1 %vm680_vm4, %v712_v24  ;;  %v696_v25 = vld [vmem:[#allocation4] sm:$0xff] }
 0x45c   : > { %2206 = vmatprep.mubr.msk.bf16.mxu1 %vm2846_vm1, %v2845_v0 }
 0x45d   : > { %v972_v28 = vmul.f32 1.442695, %v971_v27  ;;  %v697_v27 = vmul.f32 %v3428_v7, %v696_v25 }
 0x45e   : > { %v853_v54 = vpop.permute.xlu1 %852 }
 0x45f   : > { %2471 = vpow2.f32 %v972_v28  ;;  %v858_v29 = vsel %vm719_vm6, %v853_v54, 0 }
 0x460   : > { %2205 = vmatpush3.bf16.msra.mxu1 %v858_v29 }
 0x461   : > { %v2470_v30 = vpop.eup %2469  ;;  %2216 = vmatprep.subr.bf16.mxu1 %v2845_v0 }
 0x462   : > { %v1108_v31 = vpop.permute.xlu1 %1107  ;;  %v838_v32 = vsel %vm680_vm4, %v2470_v30, 0.0  ;;  %v851_v33 = vpack.c.bf16 %v2470_v30, %v2470_v30 }
 0x463   : > { %v1110_v59 = vsub.f32 %v3353_v1, %v1108_v31  ;;  %839 = vadd.xlane.f32.xlu1 %v838_v32 }
 0x464   : > { %2207 = vmatmul.mubr.msk.bf16.vlgmr.msra.gmra.mrb[8].mxu1 %vm680_vm4, %v851_v33  ;;  %v836_v33 = vld [vmem:[#allocation4 + $0x8] sm:$0xff] }
 0x465   : > { %v1111_v34 = vmul.f32 1.442695, %v1110_v59  ;;  %2218 = vmatprep.mubr.msk.bf16.mxu1 %vm2846_vm1, %v2845_v0 }
 0x466   : > { %v992_v35 = vpop.permute.xlu1 %991 }
 0x467   : > { %2473 = vpow2.f32 %v1111_v34  ;;  %v997_v36 = vsel %vm719_vm6, %v992_v35, 0  ;;  %v837_v34 = vmul.f32 %v3442_v14, %v836_v33  ;;  %v1253_v14 = vld [vmem:[#allocation4 + $0x20] sm:$0xff] }
 0x468   : > { %2217 = vmatpush3.bf16.msra.mxu1 %v997_v36 }
 0x469   : > { %v2472_v37 = vpop.eup %2471  ;;  %2228 = vmatprep.subr.bf16.mxu1 %v2845_v0 }
 0x46a   : > { %v1247_v39 = vpop.permute.xlu1 %1246  ;;  %v977_v40 = vsel %vm680_vm4, %v2472_v37, 0.0  ;;  %v990_v1 = vpack.c.bf16 %v2472_v37, %v2472_v37  ;;  %v975_v37 = vld [vmem:[#allocation4 + $0x10] sm:$0xff] }
 0x46b   : > { %v1249_v41 = vsub.f32 %v3357_v6, %v1247_v39  ;;  %978 = vadd.xlane.f32.xlu0 %v977_v40  ;;  %v976_v38 = vmul.f32 %v3433_v9, %v975_v37 }
 0x46c   : > { %2219 = vmatmul.mubr.msk.bf16.vlgmr.msra.gmra.mrb[12].mxu1 %vm680_vm4, %v990_v1  ;;  %v1114_v1 = vld [vmem:[#allocation4 + $0x18] sm:$0xff] }
 0x46d   : > { %v1250_v43 = vmul.f32 1.442695, %v1249_v41  ;;  %2229 = vmatpush3.bf16.msra.mxu1 %v1136_v42  ;;  %2230 = vmatprep.mubr.msk.bf16.mxu1 %vm2846_vm1, %v2845_v0  ;;  %v1115_v41 = vmul.f32 %v3445_v16, %v1114_v1 }
 0x46e   : > { %2240 = vmatprep.subr.bf16.mxu1 %v2845_v0 }
 0x46f   : > { %2475 = vpow2.f32 %v1250_v43 }
 0x471   : > { %v2474_v44 = vpop.eup %2473 }
 0x472   : > { %v1386_v48 = vpop.permute.xlu1 %1385  ;;  %v1116_v49 = vsel %vm680_vm4, %v2474_v44, 0.0  ;;  %v1129_v50 = vpack.c.bf16 %v2474_v44, %v2474_v44  ;;  %v1254_v44 = vmul.f32 %v3436_v21, %v1253_v14 }
 0x473   : > { %v1388_v6 = vsub.f32 %v3370_v15, %v1386_v48  ;;  %1117 = vadd.xlane.f32.xlu1 %v1116_v49  ;;  %v1392_v49 = vld [vmem:[#allocation4 + $0x28] sm:$0xff] }
 0x474   : > { %2231 = vmatmul.mubr.msk.bf16.vlgmr.msra.gmra.mrb[16].mxu1 %vm680_vm4, %v1129_v50  ;;  %v1393_v9 = vmul.f32 %v3439_v13, %v1392_v49  ;;  %v1520_v13 = vmul.f32 1.442695, %v1519_v53 }
 0x475   : > { %v1389_v55 = vmul.f32 1.442695, %v1388_v6  ;;  %2241 = vmatpush3.bf16.msra.mxu1 %v1275_v52  ;;  %2242 = vmatprep.mubr.msk.bf16.mxu1 %vm2846_vm1, %v2845_v0  ;;  %v705_v52 = vld [vmem:[#allocation5] sm:$0xff] }
 0x476   : > { %2252 = vmatprep.subr.bf16.mxu1 %v2845_v0 }
 0x477   : > { %2477 = vpow2.f32 %v1389_v55 }
 0x479   : > { %v2476_v56 = vpop.eup %2475 }
 0x47a   : > { %v1525_v58 = vpop.permute.xlu1 %1524  ;;  %v1255_v60 = vsel %vm680_vm4, %v2476_v56, 0.0  ;;  %v1268_v63 = vpack.c.bf16 %v2476_v56, %v2476_v56 }
 0x47b   : > { %v1527_v15 = vsub.f32 %v3374_v20, %v1525_v58  ;;  %1256 = vadd.xlane.f32.xlu1 %v1255_v60 }
 0x47c   : > { %2243 = vmatmul.mubr.msk.bf16.vlgmr.msra.gmra.mrb[20].mxu1 %vm680_vm4, %v1268_v63 }
 0x47d   : > { %v1528_v3 = vmul.f32 1.442695, %v1527_v15  ;;  %2253 = vmatpush3.bf16.msra.mxu1 %v1414_v2  ;;  %2254 = vmatprep.mubr.msk.bf16.mxu1 %vm2846_vm1, %v2845_v0 }
 0x47e   : > { %2264 = vmatprep.subr.bf16.mxu1 %v2845_v0 }
 0x47f   : > { %2479 = vpow2.f32 %v1528_v3 }
 0x481   : > { %v2478_v4 = vpop.eup %2477 }
 0x482   : > { %v1664_v8 = vpop.permute.xlu1 %1663  ;;  %v1394_v10 = vsel %vm680_vm4, %v2478_v4, 0.0  ;;  %v1407_v11 = vpack.c.bf16 %v2478_v4, %v2478_v4 }
 0x483   : > { %v1666_v20 = vsub.f32 %v3378_v26, %v1664_v8  ;;  %1395 = vadd.xlane.f32.xlu0 %v1394_v10 }
 0x484   : > { %2255 = vmatmul.mubr.msk.bf16.vlgmr.msra.gmra.mrb[24].mxu1 %vm680_vm4, %v1407_v11 }
 0x485   : > { %v1667_v17 = vmul.f32 1.442695, %v1666_v20  ;;  %2265 = vmatpush3.bf16.msra.mxu1 %v1553_v12  ;;  %2266 = vmatprep.mubr.msk.bf16.mxu1 %vm2846_vm1, %v2845_v0 }
 0x486   : > { %2276 = vmatprep.subr.bf16.mxu1 %v2845_v0  ;;  %v1687_v19 = vpop.permute.xlu1 %1686 }
 0x487   : > { %2481 = vpow2.f32 %v1667_v17  ;;  %v1692_v26 = vsel %vm719_vm6, %v1687_v19, 0 }
 0x488   : > { %2483 = vpow2.f32 %v1520_v13 }
 0x489   : > { %v3492_v18 = vpop.eup %2479 }
 0x48a   : > { %v1546_v22 = vpack.c.bf16 %v3492_v18, %v3492_v18  ;;  %v709_v29 = vpop.permute.xlu1 %708  ;;  %v1533_v37 = vsel %vm680_vm4, %v3492_v18, 0.0 }
 0x48b   : > { %v711_v16 = vmul.f32 %v709_v29, %v705_v52 }
 0x48c   : > { %2267 = vmatmul.mubr.msk.bf16.vlgmr.msra.gmra.mrb[28].mxu1 %vm680_vm4, %v1546_v22 }
 0x48d   : > { %2277 = vmatpush3.bf16.msra.mxu1 %v1692_v26  ;;  %2278 = vmatprep.mubr.msk.bf16.mxu1 %vm2846_vm1, %v2845_v0 }
 0x48e   : > { %v3507_v30 = vpop.permute.xlu1 %986 }
 0x491   : > { %v3500_v23 = vpop.eup %2481 }
 0x492   : > { %v1685_v24 = vpack.c.bf16 %v3500_v23, %v3500_v23  ;;  %v3509_v31 = vpop.permute.xlu1 %1264  ;;  %v3531_v17 = vpop.eup %2483 }
 0x494   : > { %2279 = vmatmul.mubr.msk.bf16.vlgmr.msra.gmra.mrb[32].mxu1 %vm680_vm4, %v1685_v24 }
 0x496   : > { %v700_v28 = vpop.xlane.xlu0 %699  ;;  %v3511_v32 = vpop.permute.xlu1 %1403 }
 0x497   : > { %v701_v54 = vadd.f32 %v700_v28, %v697_v27 }
 0x499   : > { %703 = vst.msk [vmem:[#allocation4] sm:$0xff] %vm543_vm5, %v701_v54 }
 0x49e   : > { %v3513_v59 = vpop.permute.xlu0 %847 }
 0x4a0   : > { %v1745_v1 = vld [vmem:[#allocation4] sm:$0xff] }
 0x4a2   : > { %v3517_v7 = vpop.permute.xlu0 %1125 }
 0x4f0   : > { %v840_v35 = vpop.xlane.xlu1 %839 }
 0x4f1   : > { %v841_v36 = vadd.f32 %v840_v35, %v837_v34 }
 0x4f3   : > { %842 = vst.msk [vmem:[#allocation4 + $0x8] sm:$0xff] %vm543_vm5, %v841_v36 }
 0x4f8   : > { %v979_v39 = vpop.xlane.xlu0 %978 }
 0x4f9   : > { %v980_v40 = vadd.f32 %v979_v39, %v976_v38  ;;  %v1672_v38 = vsel %vm680_vm4, %v3500_v23, 0.0  ;;  %v1659_v39 = vmul.f32 1.442695, %v1658_v62 }
 0x4fb   : > { %981 = vst.msk [vmem:[#allocation4 + $0x10] sm:$0xff] %vm543_vm5, %v980_v40  ;;  %2485 = vpow2.f32 %v1659_v39 }
 0x500   : > { %v1118_v42 = vpop.xlane.xlu1 %1117 }
 0x501   : > { %v1119_v43 = vadd.f32 %v1118_v42, %v1115_v41  ;;  %v1755_v41 = vld [vmem:[#allocation4 + $0x8] sm:$0xff] }
 0x502   : > { %v1765_v40 = vld [vmem:[#allocation4 + $0x10] sm:$0xff] }
 0x503   : > { %1120 = vst.msk [vmem:[#allocation4 + $0x18] sm:$0xff] %vm543_vm5, %v1119_v43  ;;  %2487 = vrcp.f32 %v1765_v40 }
 0x504   : > { %2489 = vrcp.f32 %v1745_v1 }
 0x505   : > { %v2486_v42 = vpop.eup %2485  ;;  %2491 = vrcp.f32 %v1755_v41 }
 0x508   : > { %v1257_v45 = vpop.xlane.xlu1 %1256 }
 0x509   : > { %v1258_v48 = vadd.f32 %v1257_v45, %v1254_v44 }
 0x50a   : > { %v1775_v18 = vld [vmem:[#allocation4 + $0x18] sm:$0xff] }
 0x50b   : > { %1259 = vst.msk [vmem:[#allocation4 + $0x20] sm:$0xff] %vm543_vm5, %v1258_v48  ;;  %2493 = vrcp.f32 %v1775_v18 }
 0x50d   : > { %v2488_v43 = vpop.eup %2487 }
 0x50e   : > { %v2490_v57 = vpop.eup %2489 }
 0x50f   : > { %v2492_v62 = vpop.eup %2491 }
 0x510   : > { %v1396_v50 = vpop.xlane.xlu0 %1395 }
 0x511   : > { %v1397_v6 = vadd.f32 %v1396_v50, %v1393_v9 }
 0x512   : > { %v1785_v23 = vld [vmem:[#allocation4 + $0x20] sm:$0xff] }
 0x513   : > { %1398 = vst.msk [vmem:[#allocation4 + $0x28] sm:$0xff] %vm543_vm5, %v1397_v6  ;;  %2495 = vrcp.f32 %v1785_v23 }
 0x515   : > { %v2494_v14 = vpop.eup %2493 }
 0x51a   : > { %v1795_v61 = vld [vmem:[#allocation4 + $0x28] sm:$0xff] }
 0x51b   : > { %2497 = vrcp.f32 %v1795_v61 }
 0x51d   : > { %v2496_v44 = vpop.eup %2495 }
 0x525   : > { %v2498_v45 = vpop.eup %2497 }
 0x52e   : > { %v757_v55 = vpop.f32.mrb[4].mxu1 }
 0x52f   : > { %v763_v56 = vadd.f32 %v757_v55, %v711_v16  ;;  %v2196_v47 = vpop.f32.mrb[5].mxu1 }
 0x530   : > { %v760_v58 = vpop.f32.mrb[6].mxu1 }
 0x531   : > { %764 = vst.msk [vmem:[#allocation5] sm:$0xff] %vm632_vm3, %v763_v56  ;;  %v2197_v21 = vpop.f32.mrb[7].mxu1 }
 0x537   : > { %v894_v60 = vpop.f32.mrb[8].mxu1 }
 0x538   : > { %v2208_v63 = vpop.f32.mrb[9].mxu1  ;;  %901 = vrot.lane.b32.xlu1 %v894_v60, %s2864_s15  ;;  %v844_v48 = vld [vmem:[#allocation5] sm:$0xff]  ;;  %s2735_s15 = sshll.u32 %s2871_s12, 4  ;;  %s2736_s15 = int_to_ptr.vmem [resolvable:$false] %s2735_s15 }
 0x539   : > { %v897_v15 = vpop.f32.mrb[10].mxu1  ;;  %v850_v49 = vmul.f32 %v3513_v59, %v844_v48  ;;  %p2738_p11 = scmp.lt.s32.totalorder %s3573_s2, %s2736_s15 }
 0x53a   : > { %v2209_v2 = vpop.f32.mrb[11].mxu1 }
 0x53f   : > { %v1033_v3 = vpop.f32.mrb[12].mxu1 }
 0x540   : > { %v2220_v4 = vpop.f32.mrb[13].mxu1  ;;  %1040 = vrot.lane.b32.xlu1 %v1033_v3, %s2865_s26  ;;  %s2737_s26 = scalar_lea.vmem %s2736_s15, 256 }
 0x541   : > { %v1036_v5 = vpop.f32.mrb[14].mxu1  ;;  %v1531_v4 = vld [vmem:[#allocation4 + $0x30] sm:$0xff]  ;;  %p2739_p2 = scmp.lt.s32.totalorder %s2737_s26, %s2731_s4 }
 0x542   : > { %v2221_v8 = vpop.f32.mrb[15].mxu1  ;;  %v1532_v5 = vmul.f32 %v3531_v17, %v1531_v4 }
 0x543   : > { %v1670_v8 = vld [vmem:[#allocation4 + $0x38] sm:$0xff]  ;;  %p2740_p10 = por %p2739_p2, %p2738_p11 }
 0x545   : > { %p2741_p1 = pnand %p2740_p10, %p2734_p7 }
 0x547   : > { %v1172_v10 = vpop.f32.mrb[16].mxu1 }
 0x548   : > { %v2232_v11 = vpop.f32.mrb[17].mxu1  ;;  %1179 = vrot.lane.b32.xlu0 %v1172_v10, %s2866_s11 }
 0x549   : > { %v1175_v20 = vpop.f32.mrb[18].mxu1 }
 0x54a   : > { %v2233_v12 = vpop.f32.mrb[19].mxu1  ;;  %v1671_v20 = vmul.f32 %v2486_v42, %v1670_v8 }
 0x54c   : > { %1542 = vperm.xlu0 %2446, %v3531_v17  }
 0x54f   : > { %v1311_v19 = vpop.f32.mrb[20].mxu1 }
 0x550   : > { %v2244_v46 = vpop.f32.mrb[21].mxu1  ;;  %1318 = vrot.lane.b32.xlu1 %v1311_v19, %s2867_s13 }
 0x551   : > { %v1314_v51 = vpop.f32.mrb[22].mxu1 }
 0x552   : > { %v2245_v53 = vpop.f32.mrb[23].mxu1 }
 0x557   : > { %v1450_v22 = vpop.f32.mrb[24].mxu1 }
 0x558   : > { %v2256_v26 = vpop.f32.mrb[25].mxu1  ;;  %1457 = vrot.lane.b32.xlu0 %v1450_v22, %s2868_s6 }
 0x559   : > { %v1453_v24 = vpop.f32.mrb[26].mxu1 }
 0x55a   : > { %v2257_v25 = vpop.f32.mrb[27].mxu1 }
 0x55f   : > { %v1589_v27 = vpop.f32.mrb[28].mxu1 }
 0x560   : > { %v2268_v28 = vpop.f32.mrb[29].mxu1 }
 0x561   : > { %v1592_v54 = vpop.f32.mrb[30].mxu1 }
 0x562   : > { %v2269_v29 = vpop.f32.mrb[31].mxu1 }
 0x567   : > { %v1728_v33 = vpop.f32.mrb[32].mxu1 }
 0x568   : > { %v2280_v34 = vpop.f32.mrb[33].mxu1 }
 0x569   : > { %v1731_v35 = vpop.f32.mrb[34].mxu1 }
 0x56a   : > { %v2281_v36 = vpop.f32.mrb[35].mxu1  ;;  %v2453_v35 = vld [vmem:[#allocation17] sm:$0xff]  }
 0x56b   : > { %2283 = vmatpush3.bf16.msra.mxu0 %v2453_v35 }
 0x56c   : > { %2284 = vmatprep.subr.bf16.mxu0 %v2845_v0 }
 0x574   : > { %1534 = vadd.xlane.f32.xlu1 %v1533_v37 }
 0x577   : > { %1673 = vadd.xlane.f32.xlu0 %v1672_v38  ;;  %v2454_v38 = vld [vmem:[#allocation17 + $0x8] sm:$0xff]  }
 0x578   : > { %2285 = vmatpush3.bf16.msra.mxu0 %v2454_v38 }
 0x585   : > { %1596 = vrot.lane.b32.xlu1 %v1589_v27, %s2869_s20 }
 0x589   : > { %1681 = vperm.xlu1 %2447, %v2486_v42  }
 0x58d   : > { %1769 = vperm.xlu0 %2446, %v2488_v43   ;;  %1735 = vrot.lane.b32.xlu1 %v1728_v33, %s2870_s17 }
 0x591   : > { %1749 = vperm.xlu1 %2447, %v2490_v57  }
 0x595   : > { %1759 = vperm.xlu1 %2447, %v2492_v62  }
 0x599   : > { %1779 = vperm.xlu1 %2447, %v2494_v14  }
 0x59d   : > { %1789 = vperm.xlu1 %2447, %v2496_v44  }
 0x5a1   : > { %1799 = vperm.xlu1 %2447, %v2498_v45  }
 0x5aa   : > { %v902_v9 = vpop.permute.xlu1 %901 }
 0x5ab   : > { %v904_v50 = vadd.f32 %v902_v9, %v850_v49 }
 0x5ad   : > { %906 = vst.msk [vmem:[#allocation5] sm:$0xff] %vm905_vm7, %v904_v50 }
 0x5b2   : > { %v1041_v16 = vpop.permute.xlu1 %1040 }
 0x5b4   : > { %v983_v6 = vld [vmem:[#allocation5] sm:$0xff] }
 0x5b5   : > { %v989_v52 = vmul.f32 %v3507_v30, %v983_v6 }
 0x5b7   : > { %v1043_v55 = vadd.f32 %v1041_v16, %v989_v52  ;;  %v2121_v16 = vld [vmem:[#allocation18] ss:$0 sm:$0xff] }
 0x5b9   : > { %1045 = vst.msk [vmem:[#allocation5] sm:$0xff] %vm1044_vm8, %v1043_v55 }
 0x5ba   : > { %v1180_v58 = vpop.permute.xlu0 %1179 }
 0x5c0   : > { %v1122_v56 = vld [vmem:[#allocation5] sm:$0xff] }
 0x5c1   : > { %v1128_v47 = vmul.f32 %v3517_v7, %v1122_v56 }
 0x5c2   : > { %v1319_v63 = vpop.permute.xlu1 %1318 }
 0x5c3   : > { %v1182_v21 = vadd.f32 %v1180_v58, %v1128_v47 }
 0x5c5   : > { %1184 = vst.msk [vmem:[#allocation5] sm:$0xff] %vm1183_vm9, %v1182_v21 }
 0x5cb   : > { %v1543_v30 = vpop.permute.xlu0 %1542 }
 0x5cc   : > { %v1261_v59 = vld [vmem:[#allocation5] sm:$0xff] }
 0x5cd   : > { %v1267_v60 = vmul.f32 %v3509_v31, %v1261_v59 }
 0x5cf   : > { %v1321_v15 = vadd.f32 %v1319_v63, %v1267_v60  ;;  %v1458_v3 = vpop.permute.xlu0 %1457 }
 0x5d1   : > { %1323 = vst.msk [vmem:[#allocation5] sm:$0xff] %vm1322_vm10, %v1321_v15 }
 0x5d8   : > { %v1400_v2 = vld [vmem:[#allocation5] sm:$0xff] }
 0x5d9   : > { %v1406_v13 = vmul.f32 %v3511_v32, %v1400_v2 }
 0x5db   : > { %v1460_v7 = vadd.f32 %v1458_v3, %v1406_v13 }
 0x5dd   : > { %1462 = vst.msk [vmem:[#allocation5] sm:$0xff] %vm1461_vm11, %v1460_v7 }
 0x5e4   : > { %v1539_v31 = vld [vmem:[#allocation5] sm:$0xff] }
 0x5e5   : > { %v1545_v19 = vmul.f32 %v1543_v30, %v1539_v31 }
 0x601   : > { %v1535_v10 = vpop.xlane.xlu1 %1534 }
 0x602   : > { %v1536_v11 = vadd.f32 %v1535_v10, %v1532_v5 }
 0x604   : > { %1537 = vst.msk [vmem:[#allocation4 + $0x30] sm:$0xff] %vm543_vm5, %v1536_v11  ;;  %v1674_v12 = vpop.xlane.xlu0 %1673 }
 0x605   : > { %v1675_v46 = vadd.f32 %v1674_v12, %v1671_v20  ;;  %v1597_v32 = vpop.permute.xlu1 %1596 }
 0x606   : > { %v1599_v51 = vadd.f32 %v1597_v32, %v1545_v19 }
 0x607   : > { %1676 = vst.msk [vmem:[#allocation4 + $0x38] sm:$0xff] %vm543_vm5, %v1675_v46 }
 0x608   : > { %1601 = vst.msk [vmem:[#allocation5] sm:$0xff] %vm1600_vm12, %v1599_v51 }
 0x609   : > { %v1682_v53 = vpop.permute.xlu1 %1681 }
 0x60b   : > { %v1805_v22 = vld [vmem:[#allocation4 + $0x30] sm:$0xff] }
 0x60c   : > { %2499 = vrcp.f32 %v1805_v22  ;;  %v1770_v40 = vpop.permute.xlu0 %1769 }
 0x60d   : > { %v1736_v25 = vpop.permute.xlu1 %1735 }
 0x60e   : > { %v1815_v17 = vld [vmem:[#allocation4 + $0x38] sm:$0xff] }
 0x60f   : > { %v1678_v26 = vld [vmem:[#allocation5] sm:$0xff]  ;;  %2501 = vrcp.f32 %v1815_v17 }
 0x610   : > { %v1684_v24 = vmul.f32 %v1682_v53, %v1678_v26 }
 0x611   : > { %v1750_v33 = vpop.permute.xlu1 %1749 }
 0x612   : > { %v1738_v27 = vadd.f32 %v1736_v25, %v1684_v24 }
 0x614   : > { %1740 = vst.msk [vmem:[#allocation5] sm:$0xff] %vm1739_vm13, %v1738_v27 }
 0x615   : > { %v1760_v37 = vpop.permute.xlu1 %1759 }
 0x616   : > { %v2500_v28 = vpop.eup %2499 }
 0x617   : > { %1809 = vperm.xlu1 %2447, %v2500_v28  }
 0x619   : > { %v2502_v54 = vpop.eup %2501  ;;  %v1780_v18 = vpop.permute.xlu1 %1779 }
 0x61b   : > { %v1744_v29 = vld [vmem:[#allocation5] sm:$0xff]  ;;  %1819 = vperm.xlu1 %2447, %v2502_v54  }
 0x61c   : > { %v1752_v34 = vmul.f32 %v1750_v33, %v1744_v29 }
 0x61d   : > { %v1790_v57 = vpop.permute.xlu1 %1789 }
 0x61e   : > { %1753 = vst.msk [vmem:[#allocation5] sm:$0xff] %vm632_vm3, %v1752_v34 }
 0x621   : > { %v1800_v0 = vpop.permute.xlu1 %1799 }
 0x625   : > { %v1754_v36 = vld [vmem:[#allocation5] sm:$0xff] }
 0x626   : > { %v1762_v39 = vmul.f32 %v1760_v37, %v1754_v36 }
 0x628   : > { %1763 = vst.msk [vmem:[#allocation5] sm:$0xff] %vm905_vm7, %v1762_v39 }
 0x62f   : > { %v1764_v1 = vld [vmem:[#allocation5] sm:$0xff] }
 0x630   : > { %v1772_v41 = vmul.f32 %v1770_v40, %v1764_v1 }
 0x632   : > { %1773 = vst.msk [vmem:[#allocation5] sm:$0xff] %vm1044_vm8, %v1772_v41 }
 0x639   : > { %v1774_v42 = vld [vmem:[#allocation5] sm:$0xff] }
 0x63a   : > { %v1782_v43 = vmul.f32 %v1780_v18, %v1774_v42 }
 0x63c   : > { %1783 = vst.msk [vmem:[#allocation5] sm:$0xff] %vm1183_vm9, %v1782_v43 }
 0x643   : > { %v1784_v23 = vld [vmem:[#allocation5] sm:$0xff] }
 0x644   : > { %v1792_v61 = vmul.f32 %v1790_v57, %v1784_v23 }
 0x646   : > { %1793 = vst.msk [vmem:[#allocation5] sm:$0xff] %vm1322_vm10, %v1792_v61 }
 0x64d   : > { %v1794_v62 = vld [vmem:[#allocation5] sm:$0xff] }
 0x64e   : > { %v1802_v14 = vmul.f32 %v1800_v0, %v1794_v62 }
 0x650   : > { %1803 = vst.msk [vmem:[#allocation5] sm:$0xff] %vm1461_vm11, %v1802_v14 }
 0x657   : > { %v1804_v44 = vld [vmem:[#allocation5] sm:$0xff] }
 0x696   : > { %v1810_v45 = vpop.permute.xlu1 %1809 }
 0x697   : > { %v1812_v48 = vmul.f32 %v1810_v45, %v1804_v44 }
 0x699   : > { %1813 = vst.msk [vmem:[#allocation5] sm:$0xff] %vm1600_vm12, %v1812_v48 }
 0x69a   : > { %v1820_v9 = vpop.permute.xlu1 %1819 }
 0x6a0   : > { %v1814_v49 = vld [vmem:[#allocation5] sm:$0xff] }
 0x6a1   : > { %v1822_v50 = vmul.f32 %v1820_v9, %v1814_v49 }
 0x6a3   : > { %1823 = vst.msk [vmem:[#allocation5] sm:$0xff] %vm1739_vm13, %v1822_v50 }
 0x6aa   : > { %v1824_v6 = vld [vmem:[#allocation5] sm:$0xff] }
 0x6ab   : > { %v1825_v52 = vpack.c.bf16 %v1824_v6, %v1824_v6 }
 0x6ad   : > { %2287 = vmatmul.mubr.msk.bf16.vlgmr.msra.gmra.mrb[36].mxu0 %vm496_vm0, %v1825_v52 }
 0x780   : > { %v1886_v55 = vpop.f32.mrb[36].mxu0 }
 0x781   : > { %v1887_v56 = vadd.f32 %v2121_v16, %v1886_v55  ;;  %v2288_v47 = vpop.f32.mrb[37].mxu0 }
 0x782   : > { %v1889_v58 = vpop.f32.mrb[38].mxu0 }
 0x783   : > { %v2289_v21 = vpop.f32.mrb[39].mxu0  ;;  %1892 = vst.msk [vmem:[%s465_s5] sm:$0xff] %vm496_vm0, %v1887_v56 }
 0x784   : > { %2744 = shalt.err (!%p2741_p1)
}
 0x785   : > { %s2745_s3 = scalar_lea.hbm %s3571_s22, 128  ;;  %s2749_s6 = scalar_lea.hbm %s3670_s25, 256 }
 0x786   : > { %p2746_p5 = scmp.ne.s32.totalorder %s3571_s22, %s2745_s3  ;;  %p2750_p12 = scmp.lt.u32.totalorder %s3571_s22, %s3670_s25 }
 0x787   : > { %p2751_p6 = scmp.lt.u32.totalorder %s2749_s6, %s2745_s3  ;;  %p2753_p4 = scmp.lt.u32.totalorder %s2745_s3, %s3571_s22 }
 0x788   : > { %p2747_p8 = pnand %p2746_p5, %p3671_p9 }
 0x789   : > { %p2752_p13 = por %p2751_p6, %p2750_p12 }
 0x78a   : > { %p2748_p3 = pneg %p2747_p8 }
 0x78b   : > { %p2754_p0 = por %p2753_p4, %p2752_p13 }
 0x78d   : > { %p2755_p7 = pnand %p2754_p0, %p2748_p3 }
 0x78f   : > { %2758 = shalt.err (!%p2755_p7)
}
 0x790   : > { %2318 = dma.vmem_to_hbm [thread:$0]  (%p3671_p9), %s3573_s2, 128, %s3571_s22, %s1894_s23  }
 0x791 PF: > { %s1920_s8 = sand.u32 1, %s2813_s27   ;;  %p3672_p11 = scmp.ne.s32.totalorder %s3657_s21, 0 }
 0x792   : > { %p3673_p2 = scmp.ge.s32.totalorder %s2833_s10, 2  ;;  %s1921_s24 = scalar_lea.sflag [#allocation8], %s1920_s8 }
 0x794   : > { %p2347_p10 = pnand %p3673_p2, %p3672_p11 }
 0x796   : > { %2808 = dma.done.wait (!%p2347_p10), %s1921_s24, 128  }
 0x797   : > { %2810 = vsyncadd (!%p2347_p10), %s1921_s24, 4294967168  ;;  %s30_s10 = sadd.s32 1, %s2833_s10   ;;  %s3674_s27 = smov %s2817_s28 }
 0x798   : > { %p27_p1 = scmp.ge.s32.totalorder %s30_s10, 4   ;;  %s3675_s28 = smov %s2821_s29 }
 0x799   : > { %s3676_s29 = smov %s3135_s14  ;;  %s3677_s30 = smov %s2829_s9 }
 0x79a   : > { %s3678_s9 = smov %s3680_s18  ;;  %29 = sbr.rel (!%p27_p1) target bundleno = 18 (0x12), region = 156 }
 0x7a1   :  { %1926 = vsyncpa [#allocation7], 1 }
 0x7a2   :  { %1928 = vsyncpa [#allocation7 + $0x1], 1 }
 0x7a3   :  { %1929 = vsyncpa [#allocation10], 1 }
 0x7a4   :  { %1931 = vsyncpa [#allocation10 + $0x1], 1 }
 0x7a5   :  { %1932 = vsyncpa [#allocation13], 1 }
 0x7a6   :  { %1933 = vsyncpa [#allocation16], 1 }
 0x7a7   :  { %1934 = vsyncpa [#allocation19], 1 }
 0x7a8   :  { %1935 = vsyncpa [#allocation8], 1 }
 0x7a9   :  { %1937 = vsyncpa [#allocation8 + $0x1], 1 }

</bundles_post_ra>
